<compile_context>
chip_gen: v7x
topology: tpu7x:2x2x1
jax: 0.10.0
libtpu: 0.0.40
codegen_flags: <defaults>
</compile_context>

<pallas_src>
import functools
import math

import jax
import jax.numpy as jnp
from jax.experimental import pallas as pl
from jax.experimental.pallas import tpu as pltpu


def _layernorm(y, gamma, beta, eps=1e-5):
    mean = jnp.mean(y, axis=-1, keepdims=True)
    var = jnp.mean((y - mean) ** 2, axis=-1, keepdims=True)
    return (y - mean) * jax.lax.rsqrt(var + eps) * gamma + beta


@functools.lru_cache(maxsize=1)
def _single_buffer_ok():
    """Probe whether pipeline_mode=pl.Buffered(1) lowers on this jax/TPU."""
    try:
        def probe(x_ref, o_ref):
            o_ref[...] = x_ref[...] * 2.0

        f = pl.pallas_call(
            probe,
            grid=(2,),
            in_specs=[pl.BlockSpec((8, 128), lambda i: (0, 0),
                                   pipeline_mode=pl.Buffered(1))],
            out_specs=pl.BlockSpec((8, 128), lambda i: (i, 0)),
            out_shape=jax.ShapeDtypeStruct((16, 128), jnp.float32),
        )
        r = jax.block_until_ready(f(jnp.ones((8, 128), jnp.float32)))
        return bool(jnp.all(r == 2.0))
    except Exception:  # fall back to default double buffering
        return False


def make_decoder_layer_kernel(tile_s, Sk, D, H, K, dil, pad):
    Hd = D // H
    scale = 1.0 / math.sqrt(Hd)

    def mm(a, b):  # lane-dense 2-D matmul; f32 accumulation on the MXU
        return jax.lax.dot_general(a.astype(b.dtype), b,
                                   (((1,), (0,)), ((), ())),
                                   preferred_element_type=jnp.float32)

    def kernel(x_ref, halo_ref, enc_ref,
               wc_ref, cg_ref, cb_ref,
               wq_ref, bq_ref, wk_ref, bk_ref, wv_ref, bv_ref, wo_ref, bo_ref,
               mg_ref, mb_ref,
               w1_ref, b1_ref, w2_ref, b2_ref, fg_ref, fb_ref,
               o_ref):
        # ---- LightConvBlock: softmaxed causal depthwise conv + res + LN -----
        xt = x_ref[0].astype(jnp.float32)                     # (tile_s, D)
        halo = halo_ref[0, 0].astype(jnp.float32)             # (pad, D)
        full = jnp.concatenate([halo, xt], axis=0)            # (pad+tile_s, D)
        wc = wc_ref[...]                                      # (K, D) taps
        acc = jnp.zeros((tile_s, D), jnp.float32)
        for k in range(K):                                    # K tiny & static
            off = k * dil
            acc = acc + wc[k:k + 1, :] * full[off:off + tile_s, :]
        conv = _layernorm(acc + xt, cg_ref[...], cb_ref[...])  # (tile_s, D)

        # ---- MHABlock: cross attention, full-width lane-dense projections ---
        enc = enc_ref[0]                                      # (Sk, D)
        cdt = wq_ref.dtype                                    # matmul operand dtype
        q = mm(conv, wq_ref[...]) + bq_ref[...]               # (tile_s, D)
        kx = mm(enc, wk_ref[...]) + bk_ref[...]               # (Sk, D)
        vx = mm(enc, wv_ref[...]) + bv_ref[...]               # (Sk, D)
        # Split heads AFTER the projections (single reshape+transpose each).
        qh = jnp.transpose(q.reshape(tile_s, H, Hd), (1, 0, 2)).astype(cdt)
        kh = jnp.transpose(kx.reshape(Sk, H, Hd), (1, 0, 2)).astype(cdt)
        vh = jnp.transpose(vx.reshape(Sk, H, Hd), (1, 0, 2)).astype(cdt)
        s = jax.lax.dot_general(qh, kh, (((2,), (2,)), ((0,), (0,))),
                                preferred_element_type=jnp.float32) * scale
        s = s - jnp.max(s, axis=-1, keepdims=True)
        p = jnp.exp(s)
        p = p * pl.reciprocal(jnp.sum(p, axis=-1, keepdims=True), approx=True)
        ctx = jax.lax.dot_general(p.astype(cdt), vh,
                                  (((2,), (1,)), ((0,), (0,))),
                                  preferred_element_type=jnp.float32)
        ctx = jnp.transpose(ctx, (1, 0, 2)).reshape(tile_s, D)  # merge heads
        attn = mm(ctx, wo_ref[...]) + bo_ref[...]             # (tile_s, D)
        mha = _layernorm(attn + conv, mg_ref[...], mb_ref[...])

        # ---- MLPBlock: Linear -> ReLU -> Linear + res + LN -------------------
        h = jnp.maximum(mm(mha, w1_ref[...]) + b1_ref[...], 0.0)
        y = mm(h, w2_ref[...]) + b2_ref[...] + mha
        o_ref[0] = _layernorm(y, fg_ref[...], fb_ref[...]).astype(o_ref.dtype)

    return kernel


def decoder_layer(x, encoder_out, params, *, n_heads, kernel_size, dilation,
                  tile_s=None, matmul_dtype=jnp.float32):
    B, S, D = x.shape
    _, Sk, _ = encoder_out.shape
    H, K = n_heads, kernel_size
    dil = 1 if dilation is None else dilation
    F = params["w1"].shape[1]
    pad = dil * (K - 1)
    assert pad >= 1, "kernel_size must be >= 2"
    if tile_s is None:
        tile_s = S
    assert S % tile_s == 0, "tile_s must divide S"
    assert tile_s == S or tile_s % 8 == 0, "tile_s must be sublane aligned"
    assert tile_s >= pad, "tile_s must cover the causal halo"
    NS = S // tile_s

    # Host-side glue (tiny, fused by XLA): softmax conv taps -> per-channel
    # taps; per-tile causal halo rows; optional weight dtype cast.  The full
    # activation is NOT padded / duplicated in HBM.
    w_soft = jax.nn.softmax(params["conv_w"], axis=-1)              # (H, K)
    w_chan = jnp.repeat(w_soft, D // H, axis=0).T                   # (K, D)
    halo_parts = [jnp.zeros((B, pad, D), x.dtype)]
    for s in range(1, NS):
        halo_parts.append(x[:, s * tile_s - pad:s * tile_s, :])
    halo = jnp.stack(halo_parts, axis=1)                            # (B,NS,pad,D)

    wdt = matmul_dtype
    wq, wk, wv, wo = (params[n].astype(wdt) for n in ("wq", "wk", "wv", "wo"))
    w1, w2 = params["w1"].astype(wdt), params["w2"].astype(wdt)

    ins = [x, halo, encoder_out,
           w_chan, params["conv_gamma"], params["conv_beta"],
           wq, params["bq"], wk, params["bk"], wv, params["bv"],
           wo, params["bo"],
           params["mha_gamma"], params["mha_beta"],
           w1, params["b1"], w2, params["b2"],
           params["mlp_gamma"], params["mlp_beta"]]

    if _single_buffer_ok():
        def pinned(shape):   # grid-invariant weights: single VMEM copy
            nd = len(shape)
            return pl.BlockSpec(shape, lambda *_: (0,) * nd,
                                pipeline_mode=pl.Buffered(1))
    else:
        def pinned(shape):
            nd = len(shape)
            return pl.BlockSpec(shape, lambda *_: (0,) * nd)

    in_specs = [
        pl.BlockSpec((1, tile_s, D), lambda b, s: (b, s, 0)),      # x tile
        pl.BlockSpec((1, 1, pad, D), lambda b, s: (b, s, 0, 0)),   # conv halo
        pl.BlockSpec((1, Sk, D), lambda b, s: (b, 0, 0)),          # encoder_out
    ] + [pinned(a.shape) for a in ins[3:]]

    # Advisory cost estimate so XLA schedules surrounding ops sensibly.
    wbytes = sum(int(a.size) * a.dtype.itemsize for a in ins[3:])
    flops = (2 * B * S * K * D                    # depthwise conv
             + 2 * B * S * D * D                  # q projection
             + 2 * B * NS * Sk * D * D * 2        # k,v projection (per tile)
             + 2 * B * S * Sk * D * 2             # scores + context
             + 2 * B * S * D * D                  # output projection
             + 2 * B * S * D * F * 2)             # MLP
    cost = pl.CostEstimate(
        flops=int(flops),
        transcendentals=int(B * H * S * Sk),
        bytes_accessed=int(4 * (x.size + halo.size + NS * encoder_out.size
                                + B * S * D) + wbytes))

    return pl.pallas_call(
        make_decoder_layer_kernel(tile_s, Sk, D, H, K, dil, pad),
        out_shape=jax.ShapeDtypeStruct((B, S, D), jnp.float32),
        grid=(B, NS),
        in_specs=in_specs,
        out_specs=pl.BlockSpec((1, tile_s, D), lambda b, s: (b, s, 0)),
        compiler_params=pltpu.CompilerParams(
            # Both axes parallel: shards across the 2 TensorCores on v7x even
            # when B is 1/odd, and gives the pipeline B*NS steps to overlap.
            dimension_semantics=("parallel", "parallel"),
            vmem_limit_bytes=64 * 1024 * 1024),
        cost_estimate=cost,
    )(*ins)


# ----------------------------------------------------------------------------
# Pure-JAX reference (same math) for a correctness check
# ----------------------------------------------------------------------------

def decoder_layer_ref(x, enc, p, *, n_heads, kernel_size, dilation):
    B, S, D = x.shape
    K, dil = kernel_size, (1 if dilation is None else dilation)
    H, Hd = n_heads, D // n_heads

    def ln(y, g, b):
        m = jnp.mean(y, -1, keepdims=True)
        v = jnp.mean((y - m) ** 2, -1, keepdims=True)
        return (y - m) / jnp.sqrt(v + 1e-5) * g + b

    w_soft = jax.nn.softmax(p["conv_w"], axis=-1)
    w_chan = jnp.repeat(w_soft, D // H, axis=0).T                   # (K, D)
    pad = dil * (K - 1)
    xpad = jnp.pad(x, ((0, 0), (pad, 0), (0, 0)))
    conv = sum(w_chan[k][None, None, :] * xpad[:, k * dil:k * dil + S, :]
               for k in range(K))
    o1 = ln(conv + x, p["conv_gamma"], p["conv_beta"])

    q = o1 @ p["wq"] + p["bq"]
    k = enc @ p["wk"] + p["bk"]
    v = enc @ p["wv"] + p["bv"]
    qh = q.reshape(B, S, H, Hd)
    kh = k.reshape(B, -1, H, Hd)
    vh = v.reshape(B, -1, H, Hd)
    s = jnp.einsum("bqhd,bkhd->bhqk", qh, kh) / math.sqrt(Hd)
    a = jax.nn.softmax(s, axis=-1)
    ctx = jnp.einsum("bhqk,bkhd->bqhd", a, vh).reshape(B, S, D)
    attn = ctx @ p["wo"] + p["bo"]
    o2 = ln(attn + o1, p["mha_gamma"], p["mha_beta"])

    h = jnp.maximum(o2 @ p["w1"] + p["b1"], 0.0)
    y = h @ p["w2"] + p["b2"] + o2
    return ln(y, p["mlp_gamma"], p["mlp_beta"])


# ----------------------------------------------------------------------------
# Deterministic parameter init
# ----------------------------------------------------------------------------

def init_params(key, d_model, n_heads, dim_ff, kernel_size):
    D, H, F, K = d_model, n_heads, dim_ff, kernel_size
    ks = jax.random.split(key, 8)
    scale = 0.1
    ones = jnp.ones((1, D), jnp.float32)
    zeros = jnp.zeros((1, D), jnp.float32)
    return {
        "conv_w": scale * jax.random.normal(ks[0], (H, K), jnp.float32),
        "conv_gamma": ones, "conv_beta": zeros,
        "wq": scale * jax.random.normal(ks[1], (D, D), jnp.float32),
        "bq": jnp.zeros((1, D), jnp.float32),
        "wk": scale * jax.random.normal(ks[2], (D, D), jnp.float32),
        "bk": jnp.zeros((1, D), jnp.float32),
        "wv": scale * jax.random.normal(ks[3], (D, D), jnp.float32),
        "bv": jnp.zeros((1, D), jnp.float32),
        "wo": scale * jax.random.normal(ks[4], (D, D), jnp.float32),
        "bo": jnp.zeros((1, D), jnp.float32),
        "mha_gamma": ones, "mha_beta": zeros,
        "w1": scale * jax.random.normal(ks[5], (D, F), jnp.float32),
        "b1": jnp.zeros((1, F), jnp.float32),
        "w2": scale * jax.random.normal(ks[6], (F, D), jnp.float32),
        "b2": jnp.zeros((1, D), jnp.float32),
        "mlp_gamma": ones, "mlp_beta": zeros,
    }


if __name__ == "__main__":
    B, S, S_ENC = 2, 16, 8
    D_MODEL, N_HEADS, DIM_FF, KSIZE, DIL = 32, 4, 64, 3, 1
    TILE_S = 8            # 2 query tiles per batch -> grid (B, NS) = (2, 2)

    key = jax.random.PRNGKey(0)
    kx, kenc, kp = jax.random.split(key, 3)
    x = jax.random.normal(kx, (B, S, D_MODEL), jnp.float32)
    encoder_out = jax.random.normal(kenc, (B, S_ENC, D_MODEL), jnp.float32)
    params = init_params(kp, D_MODEL, N_HEADS, DIM_FF, KSIZE)

    fwd = jax.jit(functools.partial(
        decoder_layer, n_heads=N_HEADS, kernel_size=KSIZE, dilation=DIL,
        tile_s=TILE_S))
    out = jax.block_until_ready(fwd(x, encoder_out, params))

    ref = jax.block_until_ready(decoder_layer_ref(
        x, encoder_out, params,
        n_heads=N_HEADS, kernel_size=KSIZE, dilation=DIL))

    assert out.shape == (B, S, D_MODEL)
    assert jnp.allclose(out, ref, atol=2e-2, rtol=2e-2), "mismatch vs reference"

    # bf16 matmul-operand path (v6e/v7x recipe): f32 accumulation + f32 LN/softmax.
    out_bf16 = jax.block_until_ready(decoder_layer(
        x, encoder_out, params, n_heads=N_HEADS, kernel_size=KSIZE,
        dilation=DIL, tile_s=TILE_S, matmul_dtype=jnp.bfloat16))
    assert out_bf16.shape == (B, S, D_MODEL)
    assert bool(jnp.all(jnp.isfinite(out_bf16)))

    print("KERNEL_OK")
</pallas_src>

<mosaic_0001>
module attributes {stable_mosaic.version = 11 : i64} {
  func.func @kernel(%arg0: i32, %arg1: i32, %arg2: memref<1x8x32xf32, #tpu.memory_space<vmem>>, %arg3: memref<1x1x2x32xf32, #tpu.memory_space<vmem>>, %arg4: memref<1x8x32xf32, #tpu.memory_space<vmem>>, %arg5: memref<3x32xf32, #tpu.memory_space<vmem>>, %arg6: memref<1x32xf32, #tpu.memory_space<vmem>>, %arg7: memref<1x32xf32, #tpu.memory_space<vmem>>, %arg8: memref<32x32xf32, #tpu.memory_space<vmem>>, %arg9: memref<1x32xf32, #tpu.memory_space<vmem>>, %arg10: memref<32x32xf32, #tpu.memory_space<vmem>>, %arg11: memref<1x32xf32, #tpu.memory_space<vmem>>, %arg12: memref<32x32xf32, #tpu.memory_space<vmem>>, %arg13: memref<1x32xf32, #tpu.memory_space<vmem>>, %arg14: memref<32x32xf32, #tpu.memory_space<vmem>>, %arg15: memref<1x32xf32, #tpu.memory_space<vmem>>, %arg16: memref<1x32xf32, #tpu.memory_space<vmem>>, %arg17: memref<1x32xf32, #tpu.memory_space<vmem>>, %arg18: memref<32x64xf32, #tpu.memory_space<vmem>>, %arg19: memref<1x64xf32, #tpu.memory_space<vmem>>, %arg20: memref<64x32xf32, #tpu.memory_space<vmem>>, %arg21: memref<1x32xf32, #tpu.memory_space<vmem>>, %arg22: memref<1x32xf32, #tpu.memory_space<vmem>>, %arg23: memref<1x32xf32, #tpu.memory_space<vmem>>, %arg24: memref<1x8x32xf32, #tpu.memory_space<vmem>>) attributes {dimension_semantics = [#tpu.dimension_semantics<parallel>, #tpu.dimension_semantics<parallel>], iteration_bounds = array<i64: 2, 2>, scalar_prefetch = 0 : i64, scratch_operands = 0 : i64, tpu.core_type = #tpu.core_type<tc>, window_params = [{transform_indices = @transform_0, window_bounds = array<i64: 1, 8, 32>}, {transform_indices = @transform_1, window_bounds = array<i64: 1, 1, 2, 32>}, {transform_indices = @transform_2, window_bounds = array<i64: 1, 8, 32>}, {pipeline_mode = #tpu.pipeline_mode<synchronous>, transform_indices = @transform_3, window_bounds = array<i64: 3, 32>}, {pipeline_mode = #tpu.pipeline_mode<synchronous>, transform_indices = @transform_4, window_bounds = array<i64: 1, 32>}, {pipeline_mode = #tpu.pipeline_mode<synchronous>, transform_indices = @transform_5, window_bounds = array<i64: 1, 32>}, {pipeline_mode = #tpu.pipeline_mode<synchronous>, transform_indices = @transform_6, window_bounds = array<i64: 32, 32>}, {pipeline_mode = #tpu.pipeline_mode<synchronous>, transform_indices = @transform_7, window_bounds = array<i64: 1, 32>}, {pipeline_mode = #tpu.pipeline_mode<synchronous>, transform_indices = @transform_8, window_bounds = array<i64: 32, 32>}, {pipeline_mode = #tpu.pipeline_mode<synchronous>, transform_indices = @transform_9, window_bounds = array<i64: 1, 32>}, {pipeline_mode = #tpu.pipeline_mode<synchronous>, transform_indices = @transform_10, window_bounds = array<i64: 32, 32>}, {pipeline_mode = #tpu.pipeline_mode<synchronous>, transform_indices = @transform_11, window_bounds = array<i64: 1, 32>}, {pipeline_mode = #tpu.pipeline_mode<synchronous>, transform_indices = @transform_12, window_bounds = array<i64: 32, 32>}, {pipeline_mode = #tpu.pipeline_mode<synchronous>, transform_indices = @transform_13, window_bounds = array<i64: 1, 32>}, {pipeline_mode = #tpu.pipeline_mode<synchronous>, transform_indices = @transform_14, window_bounds = array<i64: 1, 32>}, {pipeline_mode = #tpu.pipeline_mode<synchronous>, transform_indices = @transform_15, window_bounds = array<i64: 1, 32>}, {pipeline_mode = #tpu.pipeline_mode<synchronous>, transform_indices = @transform_16, window_bounds = array<i64: 32, 64>}, {pipeline_mode = #tpu.pipeline_mode<synchronous>, transform_indices = @transform_17, window_bounds = array<i64: 1, 64>}, {pipeline_mode = #tpu.pipeline_mode<synchronous>, transform_indices = @transform_18, window_bounds = array<i64: 64, 32>}, {pipeline_mode = #tpu.pipeline_mode<synchronous>, transform_indices = @transform_19, window_bounds = array<i64: 1, 32>}, {pipeline_mode = #tpu.pipeline_mode<synchronous>, transform_indices = @transform_20, window_bounds = array<i64: 1, 32>}, {pipeline_mode = #tpu.pipeline_mode<synchronous>, transform_indices = @transform_21, window_bounds = array<i64: 1, 32>}, {transform_indices = @transform_22, window_bounds = array<i64: 1, 8, 32>}]} {
    %c0 = arith.constant 0 : index
    %c0_0 = arith.constant 0 : index
    %c0_1 = arith.constant 0 : index
    %0 = vector.load %arg2[%c0, %c0_0, %c0_1] : memref<1x8x32xf32, #tpu.memory_space<vmem>>, vector<1x8x32xf32>
    %1 = vector.shape_cast %0 : vector<1x8x32xf32> to vector<8x32xf32>
    %c0_2 = arith.constant 0 : index
    %c0_3 = arith.constant 0 : index
    %c0_4 = arith.constant 0 : index
    %c0_5 = arith.constant 0 : index
    %2 = vector.load %arg3[%c0_2, %c0_3, %c0_4, %c0_5] : memref<1x1x2x32xf32, #tpu.memory_space<vmem>>, vector<1x1x2x32xf32>
    %3 = vector.shape_cast %2 : vector<1x1x2x32xf32> to vector<2x32xf32>
    %4 = tpu.concatenate %3, %1 in 0 : vector<2x32xf32>, vector<8x32xf32> -> vector<10x32xf32>
    %c0_6 = arith.constant 0 : index
    %c0_7 = arith.constant 0 : index
    %5 = vector.load %arg5[%c0_6, %c0_7] : memref<3x32xf32, #tpu.memory_space<vmem>>, vector<3x32xf32>
    %cst = arith.constant 0.000000e+00 : f32
    %6 = vector.broadcast %cst : f32 to vector<8x32xf32>
    %7 = vector.extract_strided_slice %5 {offsets = [0, 0], sizes = [1, 32], strides = [1, 1]} : vector<3x32xf32> to vector<1x32xf32>
    %8 = vector.extract_strided_slice %4 {offsets = [0, 0], sizes = [8, 32], strides = [1, 1]} : vector<10x32xf32> to vector<8x32xf32>
    %9 = vector.broadcast %7 : vector<1x32xf32> to vector<8x32xf32>
    %10 = arith.mulf %9, %8 : vector<8x32xf32>
    %11 = arith.addf %6, %10 : vector<8x32xf32>
    %12 = vector.extract_strided_slice %5 {offsets = [1, 0], sizes = [1, 32], strides = [1, 1]} : vector<3x32xf32> to vector<1x32xf32>
    %13 = vector.extract_strided_slice %4 {offsets = [1, 0], sizes = [8, 32], strides = [1, 1]} : vector<10x32xf32> to vector<8x32xf32>
    %14 = vector.broadcast %12 : vector<1x32xf32> to vector<8x32xf32>
    %15 = arith.mulf %14, %13 : vector<8x32xf32>
    %16 = arith.addf %11, %15 : vector<8x32xf32>
    %17 = vector.extract_strided_slice %5 {offsets = [2, 0], sizes = [1, 32], strides = [1, 1]} : vector<3x32xf32> to vector<1x32xf32>
    %18 = vector.extract_strided_slice %4 {offsets = [2, 0], sizes = [8, 32], strides = [1, 1]} : vector<10x32xf32> to vector<8x32xf32>
    %19 = vector.broadcast %17 : vector<1x32xf32> to vector<8x32xf32>
    %20 = arith.mulf %19, %18 : vector<8x32xf32>
    %21 = arith.addf %16, %20 : vector<8x32xf32>
    %22 = arith.addf %21, %1 : vector<8x32xf32>
    %c0_8 = arith.constant 0 : index
    %c0_9 = arith.constant 0 : index
    %23 = vector.load %arg6[%c0_8, %c0_9] : memref<1x32xf32, #tpu.memory_space<vmem>>, vector<1x32xf32>
    %c0_10 = arith.constant 0 : index
    %c0_11 = arith.constant 0 : index
    %24 = vector.load %arg7[%c0_10, %c0_11] : memref<1x32xf32, #tpu.memory_space<vmem>>, vector<1x32xf32>
    %cst_12 = arith.constant dense<0.000000e+00> : vector<8xf32>
    %25 = vector.multi_reduction <add>, %22, %cst_12 [1] : vector<8x32xf32> to vector<8xf32>
    %26 = vector.shape_cast %25 : vector<8xf32> to vector<8x1xf32>
    %cst_13 = arith.constant 3.200000e+01 : f32
    %27 = vector.broadcast %cst_13 : f32 to vector<8x1xf32>
    %28 = arith.divf %26, %27 : vector<8x1xf32>
    %29 = vector.broadcast %28 : vector<8x1xf32> to vector<8x32xf32>
    %30 = arith.subf %22, %29 : vector<8x32xf32>
    %31 = arith.mulf %30, %30 : vector<8x32xf32>
    %cst_14 = arith.constant dense<0.000000e+00> : vector<8xf32>
    %32 = vector.multi_reduction <add>, %31, %cst_14 [1] : vector<8x32xf32> to vector<8xf32>
    %33 = vector.shape_cast %32 : vector<8xf32> to vector<8x1xf32>
    %cst_15 = arith.constant 3.200000e+01 : f32
    %34 = vector.broadcast %cst_15 : f32 to vector<8x1xf32>
    %35 = arith.divf %33, %34 : vector<8x1xf32>
    %36 = vector.broadcast %28 : vector<8x1xf32> to vector<8x32xf32>
    %37 = arith.subf %22, %36 : vector<8x32xf32>
    %cst_16 = arith.constant 9.99999974E-6 : f32
    %38 = vector.broadcast %cst_16 : f32 to vector<8x1xf32>
    %39 = arith.addf %35, %38 : vector<8x1xf32>
    %40 = math.rsqrt %39 : vector<8x1xf32>
    %41 = vector.broadcast %40 : vector<8x1xf32> to vector<8x32xf32>
    %42 = arith.mulf %37, %41 : vector<8x32xf32>
    %43 = vector.broadcast %23 : vector<1x32xf32> to vector<8x32xf32>
    %44 = arith.mulf %42, %43 : vector<8x32xf32>
    %45 = vector.broadcast %24 : vector<1x32xf32> to vector<8x32xf32>
    %46 = arith.addf %44, %45 : vector<8x32xf32>
    %c0_17 = arith.constant 0 : index
    %c0_18 = arith.constant 0 : index
    %c0_19 = arith.constant 0 : index
    %47 = vector.load %arg4[%c0_17, %c0_18, %c0_19] : memref<1x8x32xf32, #tpu.memory_space<vmem>>, vector<1x8x32xf32>
    %48 = vector.shape_cast %47 : vector<1x8x32xf32> to vector<8x32xf32>
    %c0_20 = arith.constant 0 : index
    %c0_21 = arith.constant 0 : index
    %49 = vector.load %arg8[%c0_20, %c0_21] : memref<32x32xf32, #tpu.memory_space<vmem>>, vector<32x32xf32>
    %cst_22 = arith.constant dense<0.000000e+00> : vector<8x32xf32>
    %50 = tpu.matmul %46, %49, %cst_22 {dimension_numbers = #tpu.dot_dimension_numbers<[1], [0], [0], [1], [0, 0, 1, 1], [], []>} : vector<8x32xf32>, vector<32x32xf32>, vector<8x32xf32> -> vector<8x32xf32>
    %c0_23 = arith.constant 0 : index
    %c0_24 = arith.constant 0 : index
    %51 = vector.load %arg9[%c0_23, %c0_24] : memref<1x32xf32, #tpu.memory_space<vmem>>, vector<1x32xf32>
    %52 = vector.broadcast %51 : vector<1x32xf32> to vector<8x32xf32>
    %53 = arith.addf %50, %52 : vector<8x32xf32>
    %c0_25 = arith.constant 0 : index
    %c0_26 = arith.constant 0 : index
    %54 = vector.load %arg10[%c0_25, %c0_26] : memref<32x32xf32, #tpu.memory_space<vmem>>, vector<32x32xf32>
    %cst_27 = arith.constant dense<0.000000e+00> : vector<8x32xf32>
    %55 = tpu.matmul %48, %54, %cst_27 {dimension_numbers = #tpu.dot_dimension_numbers<[1], [0], [0], [1], [0, 0, 1, 1], [], []>} : vector<8x32xf32>, vector<32x32xf32>, vector<8x32xf32> -> vector<8x32xf32>
    %c0_28 = arith.constant 0 : index
    %c0_29 = arith.constant 0 : index
    %56 = vector.load %arg11[%c0_28, %c0_29] : memref<1x32xf32, #tpu.memory_space<vmem>>, vector<1x32xf32>
    %57 = vector.broadcast %56 : vector<1x32xf32> to vector<8x32xf32>
    %58 = arith.addf %55, %57 : vector<8x32xf32>
    %c0_30 = arith.constant 0 : index
    %c0_31 = arith.constant 0 : index
    %59 = vector.load %arg12[%c0_30, %c0_31] : memref<32x32xf32, #tpu.memory_space<vmem>>, vector<32x32xf32>
    %cst_32 = arith.constant dense<0.000000e+00> : vector<8x32xf32>
    %60 = tpu.matmul %48, %59, %cst_32 {dimension_numbers = #tpu.dot_dimension_numbers<[1], [0], [0], [1], [0, 0, 1, 1], [], []>} : vector<8x32xf32>, vector<32x32xf32>, vector<8x32xf32> -> vector<8x32xf32>
    %c0_33 = arith.constant 0 : index
    %c0_34 = arith.constant 0 : index
    %61 = vector.load %arg13[%c0_33, %c0_34] : memref<1x32xf32, #tpu.memory_space<vmem>>, vector<1x32xf32>
    %62 = vector.broadcast %61 : vector<1x32xf32> to vector<8x32xf32>
    %63 = arith.addf %60, %62 : vector<8x32xf32>
    %64 = vector.shape_cast %53 : vector<8x32xf32> to vector<8x4x8xf32>
    %65 = tpu.transpose %64, [1, 0, 2] : vector<8x4x8xf32> -> vector<4x8x8xf32>
    %66 = vector.shape_cast %58 : vector<8x32xf32> to vector<8x4x8xf32>
    %67 = tpu.transpose %66, [1, 0, 2] : vector<8x4x8xf32> -> vector<4x8x8xf32>
    %68 = vector.shape_cast %63 : vector<8x32xf32> to vector<8x4x8xf32>
    %69 = tpu.transpose %68, [1, 0, 2] : vector<8x4x8xf32> -> vector<4x8x8xf32>
    %cst_35 = arith.constant dense<0.000000e+00> : vector<4x8x8xf32>
    %70 = tpu.matmul %65, %67, %cst_35 {dimension_numbers = #tpu.dot_dimension_numbers<[2], [2], [1], [1], [0, 0, 0, 1, 1, 1], [0], [0]>} : vector<4x8x8xf32>, vector<4x8x8xf32>, vector<4x8x8xf32> -> vector<4x8x8xf32>
    %cst_36 = arith.constant 0.353553385 : f32
    %71 = vector.broadcast %cst_36 : f32 to vector<4x8x8xf32>
    %72 = arith.mulf %70, %71 : vector<4x8x8xf32>
    %cst_37 = arith.constant dense<0xFF800000> : vector<4x8xf32>
    %73 = vector.multi_reduction <maximumf>, %72, %cst_37 [2] : vector<4x8x8xf32> to vector<4x8xf32>
    %74 = vector.shape_cast %73 : vector<4x8xf32> to vector<4x8x1xf32>
    %75 = vector.broadcast %74 : vector<4x8x1xf32> to vector<4x8x8xf32>
    %76 = arith.subf %72, %75 : vector<4x8x8xf32>
    %77 = math.exp %76 : vector<4x8x8xf32>
    %cst_38 = arith.constant dense<0.000000e+00> : vector<4x8xf32>
    %78 = vector.multi_reduction <add>, %77, %cst_38 [2] : vector<4x8x8xf32> to vector<4x8xf32>
    %79 = vector.shape_cast %78 : vector<4x8xf32> to vector<4x8x1xf32>
    %80 = tpu.reciprocal %79 {approx = true} : vector<4x8x1xf32> -> vector<4x8x1xf32>
    %81 = vector.broadcast %80 : vector<4x8x1xf32> to vector<4x8x8xf32>
    %82 = arith.mulf %77, %81 : vector<4x8x8xf32>
    %cst_39 = arith.constant dense<0.000000e+00> : vector<4x8x8xf32>
    %83 = tpu.matmul %82, %69, %cst_39 {dimension_numbers = #tpu.dot_dimension_numbers<[2], [1], [1], [2], [0, 0, 0, 1, 1, 2], [0], [0]>} : vector<4x8x8xf32>, vector<4x8x8xf32>, vector<4x8x8xf32> -> vector<4x8x8xf32>
    %84 = tpu.transpose %83, [1, 0, 2] : vector<4x8x8xf32> -> vector<8x4x8xf32>
    %85 = vector.shape_cast %84 : vector<8x4x8xf32> to vector<8x32xf32>
    %c0_40 = arith.constant 0 : index
    %c0_41 = arith.constant 0 : index
    %86 = vector.load %arg14[%c0_40, %c0_41] : memref<32x32xf32, #tpu.memory_space<vmem>>, vector<32x32xf32>
    %cst_42 = arith.constant dense<0.000000e+00> : vector<8x32xf32>
    %87 = tpu.matmul %85, %86, %cst_42 {dimension_numbers = #tpu.dot_dimension_numbers<[1], [0], [0], [1], [0, 0, 1, 1], [], []>} : vector<8x32xf32>, vector<32x32xf32>, vector<8x32xf32> -> vector<8x32xf32>
    %c0_43 = arith.constant 0 : index
    %c0_44 = arith.constant 0 : index
    %88 = vector.load %arg15[%c0_43, %c0_44] : memref<1x32xf32, #tpu.memory_space<vmem>>, vector<1x32xf32>
    %89 = vector.broadcast %88 : vector<1x32xf32> to vector<8x32xf32>
    %90 = arith.addf %87, %89 : vector<8x32xf32>
    %91 = arith.addf %90, %46 : vector<8x32xf32>
    %c0_45 = arith.constant 0 : index
    %c0_46 = arith.constant 0 : index
    %92 = vector.load %arg16[%c0_45, %c0_46] : memref<1x32xf32, #tpu.memory_space<vmem>>, vector<1x32xf32>
    %c0_47 = arith.constant 0 : index
    %c0_48 = arith.constant 0 : index
    %93 = vector.load %arg17[%c0_47, %c0_48] : memref<1x32xf32, #tpu.memory_space<vmem>>, vector<1x32xf32>
    %cst_49 = arith.constant dense<0.000000e+00> : vector<8xf32>
    %94 = vector.multi_reduction <add>, %91, %cst_49 [1] : vector<8x32xf32> to vector<8xf32>
    %95 = vector.shape_cast %94 : vector<8xf32> to vector<8x1xf32>
    %cst_50 = arith.constant 3.200000e+01 : f32
    %96 = vector.broadcast %cst_50 : f32 to vector<8x1xf32>
    %97 = arith.divf %95, %96 : vector<8x1xf32>
    %98 = vector.broadcast %97 : vector<8x1xf32> to vector<8x32xf32>
    %99 = arith.subf %91, %98 : vector<8x32xf32>
    %100 = arith.mulf %99, %99 : vector<8x32xf32>
    %cst_51 = arith.constant dense<0.000000e+00> : vector<8xf32>
    %101 = vector.multi_reduction <add>, %100, %cst_51 [1] : vector<8x32xf32> to vector<8xf32>
    %102 = vector.shape_cast %101 : vector<8xf32> to vector<8x1xf32>
    %cst_52 = arith.constant 3.200000e+01 : f32
    %103 = vector.broadcast %cst_52 : f32 to vector<8x1xf32>
    %104 = arith.divf %102, %103 : vector<8x1xf32>
    %105 = vector.broadcast %97 : vector<8x1xf32> to vector<8x32xf32>
    %106 = arith.subf %91, %105 : vector<8x32xf32>
    %cst_53 = arith.constant 9.99999974E-6 : f32
    %107 = vector.broadcast %cst_53 : f32 to vector<8x1xf32>
    %108 = arith.addf %104, %107 : vector<8x1xf32>
    %109 = math.rsqrt %108 : vector<8x1xf32>
    %110 = vector.broadcast %109 : vector<8x1xf32> to vector<8x32xf32>
    %111 = arith.mulf %106, %110 : vector<8x32xf32>
    %112 = vector.broadcast %92 : vector<1x32xf32> to vector<8x32xf32>
    %113 = arith.mulf %111, %112 : vector<8x32xf32>
    %114 = vector.broadcast %93 : vector<1x32xf32> to vector<8x32xf32>
    %115 = arith.addf %113, %114 : vector<8x32xf32>
    %c0_54 = arith.constant 0 : index
    %c0_55 = arith.constant 0 : index
    %116 = vector.load %arg18[%c0_54, %c0_55] : memref<32x64xf32, #tpu.memory_space<vmem>>, vector<32x64xf32>
    %cst_56 = arith.constant dense<0.000000e+00> : vector<8x64xf32>
    %117 = tpu.matmul %115, %116, %cst_56 {dimension_numbers = #tpu.dot_dimension_numbers<[1], [0], [0], [1], [0, 0, 1, 1], [], []>} : vector<8x32xf32>, vector<32x64xf32>, vector<8x64xf32> -> vector<8x64xf32>
    %c0_57 = arith.constant 0 : index
    %c0_58 = arith.constant 0 : index
    %118 = vector.load %arg19[%c0_57, %c0_58] : memref<1x64xf32, #tpu.memory_space<vmem>>, vector<1x64xf32>
    %119 = vector.broadcast %118 : vector<1x64xf32> to vector<8x64xf32>
    %120 = arith.addf %117, %119 : vector<8x64xf32>
    %cst_59 = arith.constant 0.000000e+00 : f32
    %121 = vector.broadcast %cst_59 : f32 to vector<8x64xf32>
    %122 = arith.maximumf %120, %121 : vector<8x64xf32>
    %c0_60 = arith.constant 0 : index
    %c0_61 = arith.constant 0 : index
    %123 = vector.load %arg20[%c0_60, %c0_61] : memref<64x32xf32, #tpu.memory_space<vmem>>, vector<64x32xf32>
    %cst_62 = arith.constant dense<0.000000e+00> : vector<8x32xf32>
    %124 = tpu.matmul %122, %123, %cst_62 {dimension_numbers = #tpu.dot_dimension_numbers<[1], [0], [0], [1], [0, 0, 1, 1], [], []>} : vector<8x64xf32>, vector<64x32xf32>, vector<8x32xf32> -> vector<8x32xf32>
    %c0_63 = arith.constant 0 : index
    %c0_64 = arith.constant 0 : index
    %125 = vector.load %arg21[%c0_63, %c0_64] : memref<1x32xf32, #tpu.memory_space<vmem>>, vector<1x32xf32>
    %126 = vector.broadcast %125 : vector<1x32xf32> to vector<8x32xf32>
    %127 = arith.addf %124, %126 : vector<8x32xf32>
    %128 = arith.addf %127, %115 : vector<8x32xf32>
    %c0_65 = arith.constant 0 : index
    %c0_66 = arith.constant 0 : index
    %129 = vector.load %arg22[%c0_65, %c0_66] : memref<1x32xf32, #tpu.memory_space<vmem>>, vector<1x32xf32>
    %c0_67 = arith.constant 0 : index
    %c0_68 = arith.constant 0 : index
    %130 = vector.load %arg23[%c0_67, %c0_68] : memref<1x32xf32, #tpu.memory_space<vmem>>, vector<1x32xf32>
    %cst_69 = arith.constant dense<0.000000e+00> : vector<8xf32>
    %131 = vector.multi_reduction <add>, %128, %cst_69 [1] : vector<8x32xf32> to vector<8xf32>
    %132 = vector.shape_cast %131 : vector<8xf32> to vector<8x1xf32>
    %cst_70 = arith.constant 3.200000e+01 : f32
    %133 = vector.broadcast %cst_70 : f32 to vector<8x1xf32>
    %134 = arith.divf %132, %133 : vector<8x1xf32>
    %135 = vector.broadcast %134 : vector<8x1xf32> to vector<8x32xf32>
    %136 = arith.subf %128, %135 : vector<8x32xf32>
    %137 = arith.mulf %136, %136 : vector<8x32xf32>
    %cst_71 = arith.constant dense<0.000000e+00> : vector<8xf32>
    %138 = vector.multi_reduction <add>, %137, %cst_71 [1] : vector<8x32xf32> to vector<8xf32>
    %139 = vector.shape_cast %138 : vector<8xf32> to vector<8x1xf32>
    %cst_72 = arith.constant 3.200000e+01 : f32
    %140 = vector.broadcast %cst_72 : f32 to vector<8x1xf32>
    %141 = arith.divf %139, %140 : vector<8x1xf32>
    %142 = vector.broadcast %134 : vector<8x1xf32> to vector<8x32xf32>
    %143 = arith.subf %128, %142 : vector<8x32xf32>
    %cst_73 = arith.constant 9.99999974E-6 : f32
    %144 = vector.broadcast %cst_73 : f32 to vector<8x1xf32>
    %145 = arith.addf %141, %144 : vector<8x1xf32>
    %146 = math.rsqrt %145 : vector<8x1xf32>
    %147 = vector.broadcast %146 : vector<8x1xf32> to vector<8x32xf32>
    %148 = arith.mulf %143, %147 : vector<8x32xf32>
    %149 = vector.broadcast %129 : vector<1x32xf32> to vector<8x32xf32>
    %150 = arith.mulf %148, %149 : vector<8x32xf32>
    %151 = vector.broadcast %130 : vector<1x32xf32> to vector<8x32xf32>
    %152 = arith.addf %150, %151 : vector<8x32xf32>
    %c0_74 = arith.constant 0 : index
    %c0_75 = arith.constant 0 : index
    %c0_76 = arith.constant 0 : index
    %153 = vector.load %arg24[%c0_74, %c0_75, %c0_76] : memref<1x8x32xf32, #tpu.memory_space<vmem>>, vector<1x8x32xf32>
    %154 = vector.shape_cast %153 : vector<1x8x32xf32> to vector<8x32xf32>
    %155 = vector.shape_cast %152 : vector<8x32xf32> to vector<1x8x32xf32>
    tpu.vector_store %arg24[%c0_74, %c0_75, %c0_76], %155 {strides = array<i32>} : memref<1x8x32xf32, #tpu.memory_space<vmem>>, vector<1x8x32xf32>,
    return
  }
  func.func @transform_0(%arg0: i32, %arg1: i32) -> (i32, i32, i32) {
    %c0_i32 = arith.constant 0 : i32
    %c0_i32_0 = arith.constant 0 : i32
    return %arg0, %arg1, %c0_i32 : i32, i32, i32
  }
  func.func @transform_1(%arg0: i32, %arg1: i32) -> (i32, i32, i32, i32) {
    %c0_i32 = arith.constant 0 : i32
    %c0_i32_0 = arith.constant 0 : i32
    %c0_i32_1 = arith.constant 0 : i32
    return %arg0, %arg1, %c0_i32, %c0_i32_0 : i32, i32, i32, i32
  }
  func.func @transform_2(%arg0: i32, %arg1: i32) -> (i32, i32, i32) {
    %c0_i32 = arith.constant 0 : i32
    %c0_i32_0 = arith.constant 0 : i32
    %c0_i32_1 = arith.constant 0 : i32
    return %arg0, %c0_i32, %c0_i32_0 : i32, i32, i32
  }
  func.func @transform_3(%arg0: i32, %arg1: i32) -> (i32, i32) {
    %c0_i32 = arith.constant 0 : i32
    %c0_i32_0 = arith.constant 0 : i32
    %c0_i32_1 = arith.constant 0 : i32
    return %c0_i32, %c0_i32_0 : i32, i32
  }
  func.func @transform_4(%arg0: i32, %arg1: i32) -> (i32, i32) {
    %c0_i32 = arith.constant 0 : i32
    %c0_i32_0 = arith.constant 0 : i32
    %c0_i32_1 = arith.constant 0 : i32
    return %c0_i32, %c0_i32_0 : i32, i32
  }
  func.func @transform_5(%arg0: i32, %arg1: i32) -> (i32, i32) {
    %c0_i32 = arith.constant 0 : i32
    %c0_i32_0 = arith.constant 0 : i32
    %c0_i32_1 = arith.constant 0 : i32
    return %c0_i32, %c0_i32_0 : i32, i32
  }
  func.func @transform_6(%arg0: i32, %arg1: i32) -> (i32, i32) {
    %c0_i32 = arith.constant 0 : i32
    %c0_i32_0 = arith.constant 0 : i32
    %c0_i32_1 = arith.constant 0 : i32
    return %c0_i32, %c0_i32_0 : i32, i32
  }
  func.func @transform_7(%arg0: i32, %arg1: i32) -> (i32, i32) {
    %c0_i32 = arith.constant 0 : i32
    %c0_i32_0 = arith.constant 0 : i32
    %c0_i32_1 = arith.constant 0 : i32
    return %c0_i32, %c0_i32_0 : i32, i32
  }
  func.func @transform_8(%arg0: i32, %arg1: i32) -> (i32, i32) {
    %c0_i32 = arith.constant 0 : i32
    %c0_i32_0 = arith.constant 0 : i32
    %c0_i32_1 = arith.constant 0 : i32
    return %c0_i32, %c0_i32_0 : i32, i32
  }
  func.func @transform_9(%arg0: i32, %arg1: i32) -> (i32, i32) {
    %c0_i32 = arith.constant 0 : i32
    %c0_i32_0 = arith.constant 0 : i32
    %c0_i32_1 = arith.constant 0 : i32
    return %c0_i32, %c0_i32_0 : i32, i32
  }
  func.func @transform_10(%arg0: i32, %arg1: i32) -> (i32, i32) {
    %c0_i32 = arith.constant 0 : i32
    %c0_i32_0 = arith.constant 0 : i32
    %c0_i32_1 = arith.constant 0 : i32
    return %c0_i32, %c0_i32_0 : i32, i32
  }
  func.func @transform_11(%arg0: i32, %arg1: i32) -> (i32, i32) {
    %c0_i32 = arith.constant 0 : i32
    %c0_i32_0 = arith.constant 0 : i32
    %c0_i32_1 = arith.constant 0 : i32
    return %c0_i32, %c0_i32_0 : i32, i32
  }
  func.func @transform_12(%arg0: i32, %arg1: i32) -> (i32, i32) {
    %c0_i32 = arith.constant 0 : i32
    %c0_i32_0 = arith.constant 0 : i32
    %c0_i32_1 = arith.constant 0 : i32
    return %c0_i32, %c0_i32_0 : i32, i32
  }
  func.func @transform_13(%arg0: i32, %arg1: i32) -> (i32, i32) {
    %c0_i32 = arith.constant 0 : i32
    %c0_i32_0 = arith.constant 0 : i32
    %c0_i32_1 = arith.constant 0 : i32
    return %c0_i32, %c0_i32_0 : i32, i32
  }
  func.func @transform_14(%arg0: i32, %arg1: i32) -> (i32, i32) {
    %c0_i32 = arith.constant 0 : i32
    %c0_i32_0 = arith.constant 0 : i32
    %c0_i32_1 = arith.constant 0 : i32
    return %c0_i32, %c0_i32_0 : i32, i32
  }
  func.func @transform_15(%arg0: i32, %arg1: i32) -> (i32, i32) {
    %c0_i32 = arith.constant 0 : i32
    %c0_i32_0 = arith.constant 0 : i32
    %c0_i32_1 = arith.constant 0 : i32
    return %c0_i32, %c0_i32_0 : i32, i32
  }
  func.func @transform_16(%arg0: i32, %arg1: i32) -> (i32, i32) {
    %c0_i32 = arith.constant 0 : i32
    %c0_i32_0 = arith.constant 0 : i32
    %c0_i32_1 = arith.constant 0 : i32
    return %c0_i32, %c0_i32_0 : i32, i32
  }
  func.func @transform_17(%arg0: i32, %arg1: i32) -> (i32, i32) {
    %c0_i32 = arith.constant 0 : i32
    %c0_i32_0 = arith.constant 0 : i32
    %c0_i32_1 = arith.constant 0 : i32
    return %c0_i32, %c0_i32_0 : i32, i32
  }
  func.func @transform_18(%arg0: i32, %arg1: i32) -> (i32, i32) {
    %c0_i32 = arith.constant 0 : i32
    %c0_i32_0 = arith.constant 0 : i32
    %c0_i32_1 = arith.constant 0 : i32
    return %c0_i32, %c0_i32_0 : i32, i32
  }
  func.func @transform_19(%arg0: i32, %arg1: i32) -> (i32, i32) {
    %c0_i32 = arith.constant 0 : i32
    %c0_i32_0 = arith.constant 0 : i32
    %c0_i32_1 = arith.constant 0 : i32
    return %c0_i32, %c0_i32_0 : i32, i32
  }
  func.func @transform_20(%arg0: i32, %arg1: i32) -> (i32, i32) {
    %c0_i32 = arith.constant 0 : i32
    %c0_i32_0 = arith.constant 0 : i32
    %c0_i32_1 = arith.constant 0 : i32
    return %c0_i32, %c0_i32_0 : i32, i32
  }
  func.func @transform_21(%arg0: i32, %arg1: i32) -> (i32, i32) {
    %c0_i32 = arith.constant 0 : i32
    %c0_i32_0 = arith.constant 0 : i32
    %c0_i32_1 = arith.constant 0 : i32
    return %c0_i32, %c0_i32_0 : i32, i32
  }
  func.func @transform_22(%arg0: i32, %arg1: i32) -> (i32, i32, i32) {
    %c0_i32 = arith.constant 0 : i32
    %c0_i32_0 = arith.constant 0 : i32
    return %arg0, %arg1, %c0_i32 : i32, i32, i32
  }
}

</mosaic_0001>

<bundles_post_ra>
// kernel: decoder_layer.1
= control target key start
LH: loop header
LB: loop body
LE: loop exit
PB: predicated region body
PF: predicated region fallthrough
CT: control target
= control target key end

     0   :  { %s5798_s0 = inlined_call_operand.hbm [shape: f32[2,16,32], index: 0, kind: input, shape index: {}]   ;;  %s5799_s1 = inlined_call_operand.hbm [shape: f32[2,2,2,32], index: 1, kind: input, shape index: {}]   ;;  %s5800_s2 = inlined_call_operand.hbm [shape: f32[2,8,32], index: 2, kind: input, shape index: {}]   ;;  %s5801_s3 = inlined_call_operand.hbm [shape: f32[3,32], index: 3, kind: input, shape index: {}]   ;;  %s5802_s4 = inlined_call_operand.hbm [shape: f32[1,32], index: 4, kind: input, shape index: {}]   ;;  %s5803_s5 = inlined_call_operand.hbm [shape: f32[1,32], index: 5, kind: input, shape index: {}]   ;;  %s5804_s6 = inlined_call_operand.hbm [shape: f32[32,32], index: 6, kind: input, shape index: {}]   ;;  %s5805_s7 = inlined_call_operand.hbm [shape: f32[1,32], index: 7, kind: input, shape index: {}]   ;;  %s5806_s8 = inlined_call_operand.hbm [shape: f32[32,32], index: 8, kind: input, shape index: {}]   ;;  %s5807_s9 = inlined_call_operand.hbm [shape: f32[1,32], index: 9, kind: input, shape index: {}]   ;;  %s5808_s10 = inlined_call_operand.hbm [shape: f32[32,32], index: 10, kind: input, shape index: {}]   ;;  %s5809_s11 = inlined_call_operand.hbm [shape: f32[1,32], index: 11, kind: input, shape index: {}]   ;;  %s5810_s12 = inlined_call_operand.hbm [shape: f32[32,32], index: 12, kind: input, shape index: {}]   ;;  %s5811_s13 = inlined_call_operand.hbm [shape: f32[1,32], index: 13, kind: input, shape index: {}]   ;;  %s5812_s14 = inlined_call_operand.hbm [shape: f32[1,32], index: 14, kind: input, shape index: {}]   ;;  %s5813_s15 = inlined_call_operand.hbm [shape: f32[1,32], index: 15, kind: input, shape index: {}]   ;;  %s5814_s16 = inlined_call_operand.hbm [shape: f32[32,64], index: 16, kind: input, shape index: {}]   ;;  %s5815_s17 = inlined_call_operand.hbm [shape: f32[1,64], index: 17, kind: input, shape index: {}]   ;;  %s5816_s18 = inlined_call_operand.hbm [shape: f32[64,32], index: 18, kind: input, shape index: {}]   ;;  %s5817_s19 = inlined_call_operand.hbm [shape: f32[1,32], index: 19, kind: input, shape index: {}]   ;;  %s5818_s20 = inlined_call_operand.hbm [shape: f32[1,32], index: 20, kind: input, shape index: {}]   ;;  %s5819_s21 = inlined_call_operand.hbm [shape: f32[1,32], index: 21, kind: input, shape index: {}]   ;;  %s5820_s22 = inlined_call_operand.hbm [shape: f32[2,16,32], index: 22, kind: output, shape index: {}]  }
   0x1   :  { %5867 = sst [smem:[#allocation65_spill]] %s5798_s0 }
   0x2   :  { %5868 = sst [smem:[#allocation66_spill]] %s5799_s1 }
   0x3   :  { %5869 = sst [smem:[#allocation67_spill]] %s5800_s2 }
   0x4   :  { %5870 = sst [smem:[#allocation68_spill]] %s5801_s3 }
   0x5   :  { %5871 = sst [smem:[#allocation69_spill]] %s5802_s4 }
   0x6   :  { %5872 = sst [smem:[#allocation70_spill]] %s5803_s5 }
   0x7   :  { %5873 = sst [smem:[#allocation71_spill]] %s5804_s6 }
   0x8   :  { %5874 = sst [smem:[#allocation72_spill]] %s5805_s7 }
   0x9   :  { %5875 = sst [smem:[#allocation73_spill]] %s5806_s8 }
   0xa   :  { %5876 = sst [smem:[#allocation74_spill]] %s5807_s9 }
   0xb   :  { %5877 = sst [smem:[#allocation75_spill]] %s5808_s10 }
   0xc   :  { %5878 = sst [smem:[#allocation76_spill]] %s5809_s11 }
   0xd   :  { %5879 = sst [smem:[#allocation77_spill]] %s5810_s12 }
   0xe   :  { %5880 = sst [smem:[#allocation78_spill]] %s5811_s13 }
   0xf   :  { %5881 = sst [smem:[#allocation79_spill]] %s5812_s14 }
  0x10   :  { %5882 = sst [smem:[#allocation80_spill]] %s5813_s15 }
  0x11   :  { %5883 = sst [smem:[#allocation81_spill]] %s5814_s16 }
  0x12   :  { %5884 = sst [smem:[#allocation82_spill]] %s5815_s17 }
  0x13   :  { %5885 = sst [smem:[#allocation83_spill]] %s5816_s18 }
  0x14   :  { %5886 = sst [smem:[#allocation84_spill]] %s5817_s19 }
  0x15   :  { %5887 = sst [smem:[#allocation85_spill]] %s5818_s20 }
  0x16   :  { %5888 = sst [smem:[#allocation86_spill]] %s5819_s21 }
  0x17   :  { %5889 = sst [smem:[#allocation87_spill]] %s5820_s22 }
  0x18   :  { %27 = vsyncpa [#allocation3], 0 }
  0x19   :  { %29 = vsyncpa [#allocation3 + $0x1], 0 }
  0x1a   :  { %30 = vsyncpa [#allocation6], 0 }
  0x1b   :  { %32 = vsyncpa [#allocation6 + $0x1], 0 }
  0x1c   :  { %33 = vsyncpa [#allocation9], 0 }
  0x1d   :  { %34 = vsyncpa [#allocation12], 0 }
  0x1e   :  { %35 = vsyncpa [#allocation15], 0 }
  0x1f   :  { %36 = vsyncpa [#allocation18], 0 }
  0x20   :  { %37 = vsyncpa [#allocation21], 0 }
  0x21   :  { %38 = vsyncpa [#allocation24], 0 }
  0x22   :  { %39 = vsyncpa [#allocation27], 0 }
  0x23   :  { %40 = vsyncpa [#allocation30], 0 }
  0x24   :  { %41 = vsyncpa [#allocation33], 0 }
  0x25   :  { %42 = vsyncpa [#allocation36], 0 }
  0x26   :  { %43 = vsyncpa [#allocation4], 0 }
  0x27   :  { %45 = vsyncpa [#allocation4 + $0x1], 0  ;;  %s4835_s3 = smov 0   ;;  %s4837_s28 = smov 0  }
  0x28   :  { %s4839_s29 = smov 0   ;;  %s4841_s30 = smov 0  }
  0x29   :  { %s4843_s4 = smov 0   ;;  %s4845_s0 = smov 0  }
  0x2a   :  { %s4847_s23 = smov 0   ;;  %s4849_s1 = smov 0  }
  0x2b   :  { %s4851_s5 = smov 0   ;;  %s4853_s24 = smov 0  }
  0x2c   :  { %s4855_s6 = smov 0  }
  0x2d LB: > { %5890 = sst [smem:[#allocation52_spill]] %s4642_s3  ;;  %s4891_s25 = sadd.s32 4294967295, %s4682_s6   ;;  %s4682_s6 = sphi %s4855_s6, %s51_s6   ;;  %s4678_s24 = sphi %s4853_s24, %s5993_s24   ;;  %s4674_s5 = sphi %s4851_s5, %s5987_s5   ;;  %s4670_s1 = sphi %s4849_s1, %s5992_s1   ;;  %s4666_s23 = sphi %s4847_s23, %s5986_s23   ;;  %s4662_s0 = sphi %s4845_s0, %s5985_s0   ;;  %s4658_s4 = sphi %s4843_s4, %s5991_s4   ;;  %s4654_s30 = sphi %s4841_s30, %s5990_s30   ;;  %s4650_s29 = sphi %s4839_s29, %s5989_s29   ;;  %s4646_s28 = sphi %s4837_s28, %s5983_s28   ;;  %s4642_s3 = sphi %s4835_s3, %s5982_s3  }
  0x2e   : > { %5891 = sst [smem:[#allocation53_spill]] %s4646_s28  ;;  %p3250_p0 = scmp.ge.s32.totalorder %s4682_s6, 1 }
  0x2f   : > { %5892 = sst [smem:[#allocation54_spill]] %s4650_s29  ;;  %p5836_p1 = scmp.eq.s32.totalorder %s4891_s25, 0 }
  0x30   : > { %5893 = sst [smem:[#allocation55_spill]] %s4654_s30  ;;  %p577_p2 = scmp.lt.s32.totalorder %s4682_s6, 5 }
  0x31   : > { %5894 = sst [smem:[#allocation56_spill]] %s4662_s0  ;;  %s4684_s2 = smov [#allocation8]  }
  0x32   : > { %5895 = sst [smem:[#allocation57_spill]] %s4666_s23  ;;  %p4896_p3 = pnand %p3250_p0, %p577_p2 }
  0x33   : > { %5896 = sst [smem:[#allocation58_spill]] %s4670_s1  ;;  %s590_s27 = sshll.u32 %s4684_s2, 4  ;;  %s591_s27 = int_to_ptr.vmem [resolvable:$true] %s590_s27 }
  0x34   : > { %5897 = sst [smem:[#allocation59_spill]] %s4674_s5  ;;  %p3636_p4 = pneg %p4896_p3 }
  0x35   : > { %s5898_s26 = scalar_select %p4896_p3, 1, 0 }
  0x36   : > { %s4685_s22 = smov [#allocation11]   ;;  %p4904_p5 = pnand %p3636_p4, %p5836_p1 }
  0x37   : > { %5899 = sst [smem:[#allocation60_spill]] %s5898_s26  ;;  %s612_s23 = sshll.u32 %s4685_s22, 4  ;;  %s4908_s23 = int_to_ptr.vmem [resolvable:$true] %s612_s23 }
  0x38   : > { %s5900_s1 = scalar_select %p4904_p5, 1, 0 }
  0x39   : > { %s4686_s3 = smov [#allocation14]   ;;  %s5901_s2 = sld [smem:[#allocation68_spill]] }
  0x3a   : > { %s636_s28 = sshll.u32 %s4686_s3, 4  ;;  %p4920_p7 = pneg %p4904_p5  ;;  %s4910_s28 = int_to_ptr.vmem [resolvable:$true] %s636_s28 }
  0x3f   : > { %s3890_s20 = scalar_lea.hbm %s5901_s2, 64 }
  0x40   : > { %p3891_p6 = scmp.ne.s32.totalorder %s5901_s2, %s3890_s20  ;;  %p3897_p10 = scmp.lt.u32.totalorder %s3890_s20, %s5901_s2 }
  0x42   : > { %p3893_p8 = pnand %p4920_p7, %p3891_p6 }
  0x44   : > { %p3894_p9 = pneg %p3893_p8 }
  0x46   : > { %p3899_p11 = pnand %p3897_p10, %p3894_p9 }
  0x48   : > { %3902 = shalt.err (!%p3899_p11)
}
  0x49   : > { %s3903_s21 = scalar_lea.vmem %s591_s27, 64  ;;  %p3911_p2 = scmp.lt.s32.totalorder %s591_s27, %s591_s27 }
  0x4a   : > { %p3904_p12 = scmp.ne.s32.totalorder %s591_s27, %s3903_s21  ;;  %p3912_p4 = scmp.lt.s32.totalorder %s3903_s21, %s3903_s21 }
  0x4c   : > { %p3906_p13 = pnand %p3904_p12, %p4920_p7  ;;  %p3913_p1 = por %p3912_p4, %p3911_p2 }
  0x4e   : > { %p3907_p0 = pneg %p3906_p13 }
  0x50   : > { %p3914_p3 = pnand %p3913_p1, %p3907_p0 }
  0x52   : > { %3917 = shalt.err (!%p3914_p3)
}
  0x53   : > { %3639 = dma.hbm_to_vmem [thread:$0]  (!%p4904_p5), %s5901_s2, 64, %s591_s27, [#allocation9]  }
  0x54   : > { %s5903_s26 = sld [smem:[#allocation70_spill]] }
  0x5a   : > { %s3918_s3 = scalar_lea.hbm %s5903_s26, 16 }
  0x5b   : > { %p3919_p6 = scmp.ne.s32.totalorder %s5903_s26, %s3918_s3  ;;  %p3925_p1 = scmp.lt.u32.totalorder %s3918_s3, %s5903_s26 }
  0x5d   : > { %p3921_p8 = pnand %p3919_p6, %p4920_p7 }
  0x5f   : > { %p3922_p9 = pneg %p3921_p8 }
  0x61   : > { %p3927_p3 = pnand %p3925_p1, %p3922_p9 }
  0x63   : > { %3930 = shalt.err (!%p3927_p3)
}
  0x64   : > { %s3931_s27 = scalar_lea.vmem %s4908_s23, 16  ;;  %s3938_s12 = scalar_lea.vmem %s4908_s23, 32 }
  0x65   : > { %p3932_p10 = scmp.ne.s32.totalorder %s4908_s23, %s3931_s27  ;;  %p3939_p13 = scmp.lt.s32.totalorder %s4908_s23, %s4908_s23 }
  0x66   : > { %p3940_p0 = scmp.lt.s32.totalorder %s3938_s12, %s3931_s27 }
  0x67   : > { %p3934_p11 = pnand %p3932_p10, %p4920_p7 }
  0x68   : > { %p3941_p2 = por %p3940_p0, %p3939_p13 }
  0x69   : > { %p3935_p12 = pneg %p3934_p11 }
  0x6b   : > { %p3942_p4 = pnand %p3941_p2, %p3935_p12 }
  0x6d   : > { %3945 = shalt.err (!%p3942_p4)
}
  0x6e   : > { %3645 = dma.hbm_to_vmem [thread:$0]  (!%p4904_p5), %s5903_s26, 16, %s4908_s23, [#allocation12]  }
  0x6f   : > { %s5904_s7 = sld [smem:[#allocation72_spill]] }
  0x75   : > { %s3946_s16 = scalar_lea.hbm %s5904_s7, 16 }
  0x76   : > { %p3947_p6 = scmp.ne.s32.totalorder %s5904_s7, %s3946_s16  ;;  %p3953_p1 = scmp.lt.u32.totalorder %s3946_s16, %s5904_s7 }
  0x78   : > { %p3949_p8 = pnand %p3947_p6, %p4920_p7 }
  0x7a   : > { %p3950_p9 = pneg %p3949_p8 }
  0x7c   : > { %p3955_p3 = pnand %p3953_p1, %p3950_p9 }
  0x7e   : > { %3958 = shalt.err (!%p3955_p3)
}
  0x7f   : > { %s3959_s23 = scalar_lea.vmem %s4910_s28, 16  ;;  %s3966_s12 = scalar_lea.vmem %s4910_s28, 32 }
  0x80   : > { %p3960_p10 = scmp.ne.s32.totalorder %s4910_s28, %s3959_s23  ;;  %p3967_p13 = scmp.lt.s32.totalorder %s4910_s28, %s4910_s28 }
  0x81   : > { %p3968_p0 = scmp.lt.s32.totalorder %s3966_s12, %s3959_s23 }
  0x82   : > { %p3962_p11 = pnand %p3960_p10, %p4920_p7 }
  0x83   : > { %p3969_p2 = por %p3968_p0, %p3967_p13 }
  0x84   : > { %p3963_p12 = pneg %p3962_p11 }
  0x86   : > { %p3970_p4 = pnand %p3969_p2, %p3963_p12 }
  0x88   : > { %3973 = shalt.err (!%p3970_p4)
}
  0x89   : > { %3651 = dma.hbm_to_vmem [thread:$0]  (!%p4904_p5), %s5904_s7, 16, %s4910_s28, [#allocation15]  }
  0x8a   : > { %s4687_s18 = smov [#allocation17]   ;;  %s4688_s16 = smov [#allocation20]  }
  0x8b   : > { %s660_s29 = sshll.u32 %s4687_s18, 4  ;;  %s684_s20 = sshll.u32 %s4688_s16, 4  ;;  %s661_s29 = int_to_ptr.vmem [resolvable:$true] %s660_s29  ;;  %s685_s20 = int_to_ptr.vmem [resolvable:$true] %s684_s20 }
  0x8c   : > { %s5905_s9 = sld [smem:[#allocation74_spill]] }
  0x92   : > { %s3974_s27 = scalar_lea.hbm %s5905_s9, 16 }
  0x93   : > { %p3975_p6 = scmp.ne.s32.totalorder %s5905_s9, %s3974_s27  ;;  %p3981_p1 = scmp.lt.u32.totalorder %s3974_s27, %s5905_s9 }
  0x95   : > { %p3977_p8 = pnand %p3975_p6, %p4920_p7 }
  0x97   : > { %p3978_p9 = pneg %p3977_p8 }
  0x99   : > { %p3983_p3 = pnand %p3981_p1, %p3978_p9 }
  0x9b   : > { %3986 = shalt.err (!%p3983_p3)
}
  0x9c   : > { %s3987_s28 = scalar_lea.vmem %s661_s29, 16  ;;  %s3994_s14 = scalar_lea.vmem %s661_s29, 32 }
  0x9d   : > { %p3988_p10 = scmp.ne.s32.totalorder %s661_s29, %s3987_s28  ;;  %p3995_p13 = scmp.lt.s32.totalorder %s661_s29, %s661_s29 }
  0x9e   : > { %p3996_p0 = scmp.lt.s32.totalorder %s3994_s14, %s3987_s28 }
  0x9f   : > { %p3990_p11 = pnand %p3988_p10, %p4920_p7 }
  0xa0   : > { %p3997_p2 = por %p3996_p0, %p3995_p13 }
  0xa1   : > { %p3991_p12 = pneg %p3990_p11 }
  0xa3   : > { %p3998_p4 = pnand %p3997_p2, %p3991_p12 }
  0xa5   : > { %4001 = shalt.err (!%p3998_p4)
}
  0xa6   : > { %3657 = dma.hbm_to_vmem [thread:$0]  (!%p4904_p5), %s5905_s9, 16, %s661_s29, [#allocation18]  }
  0xa7   : > { %s5906_s11 = sld [smem:[#allocation76_spill]] }
  0xad   : > { %s4002_s21 = scalar_lea.hbm %s5906_s11, 16 }
  0xae   : > { %p4003_p6 = scmp.ne.s32.totalorder %s5906_s11, %s4002_s21  ;;  %p4009_p1 = scmp.lt.u32.totalorder %s4002_s21, %s5906_s11 }
  0xb0   : > { %p4005_p8 = pnand %p4003_p6, %p4920_p7 }
  0xb2   : > { %p4006_p9 = pneg %p4005_p8 }
  0xb4   : > { %p4011_p3 = pnand %p4009_p1, %p4006_p9 }
  0xb6   : > { %4014 = shalt.err (!%p4011_p3)
}
  0xb7   : > { %s4015_s28 = scalar_lea.vmem %s685_s20, 16  ;;  %s4022_s29 = scalar_lea.vmem %s685_s20, 32 }
  0xb8   : > { %p4016_p10 = scmp.ne.s32.totalorder %s685_s20, %s4015_s28  ;;  %p4023_p13 = scmp.lt.s32.totalorder %s685_s20, %s685_s20 }
  0xb9   : > { %p4024_p0 = scmp.lt.s32.totalorder %s4022_s29, %s4015_s28 }
  0xba   : > { %p4018_p11 = pnand %p4016_p10, %p4920_p7 }
  0xbb   : > { %p4025_p2 = por %p4024_p0, %p4023_p13 }
  0xbc   : > { %p4019_p12 = pneg %p4018_p11 }
  0xbe   : > { %p4026_p4 = pnand %p4025_p2, %p4019_p12 }
  0xc0   : > { %4029 = shalt.err (!%p4026_p4)
}
  0xc1   : > { %3663 = dma.hbm_to_vmem [thread:$0]  (!%p4904_p5), %s5906_s11, 16, %s685_s20, [#allocation21]  }
  0xc2   : > { %s4689_s16 = smov [#allocation23]   ;;  %s4690_s3 = smov [#allocation26]  }
  0xc3   : > { %s708_s2 = sshll.u32 %s4689_s16, 4  ;;  %s730_s21 = sshll.u32 %s4690_s3, 4  ;;  %s709_s2 = int_to_ptr.vmem [resolvable:$true] %s708_s2  ;;  %s731_s21 = int_to_ptr.vmem [resolvable:$true] %s730_s21 }
  0xc4   : > { %s5907_s13 = sld [smem:[#allocation78_spill]] }
  0xca   : > { %s4030_s12 = scalar_lea.hbm %s5907_s13, 16 }
  0xcb   : > { %p4031_p6 = scmp.ne.s32.totalorder %s5907_s13, %s4030_s12  ;;  %p4037_p1 = scmp.lt.u32.totalorder %s4030_s12, %s5907_s13 }
  0xcd   : > { %p4033_p8 = pnand %p4031_p6, %p4920_p7 }
  0xcf   : > { %p4034_p9 = pneg %p4033_p8 }
  0xd1   : > { %p4039_p3 = pnand %p4037_p1, %p4034_p9 }
  0xd3   : > { %4042 = shalt.err (!%p4039_p3)
}
  0xd4   : > { %s4043_s20 = scalar_lea.vmem %s709_s2, 16  ;;  %s4050_s18 = scalar_lea.vmem %s709_s2, 32 }
  0xd5   : > { %p4044_p10 = scmp.ne.s32.totalorder %s709_s2, %s4043_s20  ;;  %p4051_p13 = scmp.lt.s32.totalorder %s709_s2, %s709_s2 }
  0xd6   : > { %p4052_p0 = scmp.lt.s32.totalorder %s4050_s18, %s4043_s20 }
  0xd7   : > { %p4046_p11 = pnand %p4044_p10, %p4920_p7 }
  0xd8   : > { %p4053_p2 = por %p4052_p0, %p4051_p13 }
  0xd9   : > { %p4047_p12 = pneg %p4046_p11 }
  0xdb   : > { %p4054_p4 = pnand %p4053_p2, %p4047_p12 }
  0xdd   : > { %4057 = shalt.err (!%p4054_p4)
}
  0xde   : > { %3669 = dma.hbm_to_vmem [thread:$0]  (!%p4904_p5), %s5907_s13, 16, %s709_s2, [#allocation24]  }
  0xdf   : > { %s5908_s15 = sld [smem:[#allocation80_spill]] }
  0xe5   : > { %s4058_s12 = scalar_lea.hbm %s5908_s15, 16 }
  0xe6   : > { %p4059_p6 = scmp.ne.s32.totalorder %s5908_s15, %s4058_s12  ;;  %p4065_p1 = scmp.lt.u32.totalorder %s4058_s12, %s5908_s15 }
  0xe8   : > { %p4061_p8 = pnand %p4059_p6, %p4920_p7 }
  0xea   : > { %p4062_p9 = pneg %p4061_p8 }
  0xec   : > { %p4067_p3 = pnand %p4065_p1, %p4062_p9 }
  0xee   : > { %4070 = shalt.err (!%p4067_p3)
}
  0xef   : > { %s4071_s20 = scalar_lea.vmem %s731_s21, 16  ;;  %s4078_s2 = scalar_lea.vmem %s731_s21, 32 }
  0xf0   : > { %p4072_p10 = scmp.ne.s32.totalorder %s731_s21, %s4071_s20  ;;  %p4079_p13 = scmp.lt.s32.totalorder %s731_s21, %s731_s21 }
  0xf1   : > { %p4080_p0 = scmp.lt.s32.totalorder %s4078_s2, %s4071_s20 }
  0xf2   : > { %p4074_p11 = pnand %p4072_p10, %p4920_p7 }
  0xf3   : > { %p4081_p2 = por %p4080_p0, %p4079_p13 }
  0xf4   : > { %p4075_p12 = pneg %p4074_p11 }
  0xf6   : > { %p4082_p4 = pnand %p4081_p2, %p4075_p12 }
  0xf8   : > { %4085 = shalt.err (!%p4082_p4)
}
  0xf9   : > { %3675 = dma.hbm_to_vmem [thread:$0]  (!%p4904_p5), %s5908_s15, 16, %s731_s21, [#allocation27]  }
  0xfa   : > { %s4691_s3 = smov [#allocation29]   ;;  %s4692_s23 = smov [#allocation32]  }
  0xfb   : > { %s754_s27 = sshll.u32 %s4691_s3, 4  ;;  %s778_s12 = sshll.u32 %s4692_s23, 4  ;;  %s755_s27 = int_to_ptr.vmem [resolvable:$true] %s754_s27  ;;  %s779_s12 = int_to_ptr.vmem [resolvable:$true] %s778_s12 }
  0xfc   : > { %s5909_s17 = sld [smem:[#allocation82_spill]] }
 0x102   : > { %s4086_s29 = scalar_lea.hbm %s5909_s17, 16 }
 0x103   : > { %p4087_p6 = scmp.ne.s32.totalorder %s5909_s17, %s4086_s29  ;;  %p4093_p1 = scmp.lt.u32.totalorder %s4086_s29, %s5909_s17 }
 0x105   : > { %p4089_p8 = pnand %p4087_p6, %p4920_p7 }
 0x107   : > { %p4090_p9 = pneg %p4089_p8 }
 0x109   : > { %p4095_p3 = pnand %p4093_p1, %p4090_p9 }
 0x10b   : > { %4098 = shalt.err (!%p4095_p3)
}
 0x10c   : > { %s4099_s21 = scalar_lea.vmem %s755_s27, 16  ;;  %s4106_s16 = scalar_lea.vmem %s755_s27, 32 }
 0x10d   : > { %p4100_p10 = scmp.ne.s32.totalorder %s755_s27, %s4099_s21  ;;  %p4107_p13 = scmp.lt.s32.totalorder %s755_s27, %s755_s27 }
 0x10e   : > { %p4108_p0 = scmp.lt.s32.totalorder %s4106_s16, %s4099_s21 }
 0x10f   : > { %p4102_p11 = pnand %p4100_p10, %p4920_p7 }
 0x110   : > { %p4109_p2 = por %p4108_p0, %p4107_p13 }
 0x111   : > { %p4103_p12 = pneg %p4102_p11 }
 0x113   : > { %p4110_p4 = pnand %p4109_p2, %p4103_p12 }
 0x115   : > { %4113 = shalt.err (!%p4110_p4)
}
 0x116   : > { %3681 = dma.hbm_to_vmem [thread:$0]  (!%p4904_p5), %s5909_s17, 16, %s755_s27, [#allocation30]  }
 0x117   : > { %s5910_s19 = sld [smem:[#allocation84_spill]] }
 0x11d   : > { %s4114_s29 = scalar_lea.hbm %s5910_s19, 16 }
 0x11e   : > { %p4115_p6 = scmp.ne.s32.totalorder %s5910_s19, %s4114_s29  ;;  %p4121_p1 = scmp.lt.u32.totalorder %s4114_s29, %s5910_s19 }
 0x120   : > { %p4117_p8 = pnand %p4115_p6, %p4920_p7 }
 0x122   : > { %p4118_p9 = pneg %p4117_p8 }
 0x124   : > { %p4123_p3 = pnand %p4121_p1, %p4118_p9 }
 0x126   : > { %4126 = shalt.err (!%p4123_p3)
}
 0x127   : > { %s4127_s21 = scalar_lea.vmem %s779_s12, 16  ;;  %s4134_s27 = scalar_lea.vmem %s779_s12, 32 }
 0x128   : > { %p4128_p10 = scmp.ne.s32.totalorder %s779_s12, %s4127_s21  ;;  %p4135_p13 = scmp.lt.s32.totalorder %s779_s12, %s779_s12 }
 0x129   : > { %p4136_p0 = scmp.lt.s32.totalorder %s4134_s27, %s4127_s21 }
 0x12a   : > { %p4130_p11 = pnand %p4128_p10, %p4920_p7 }
 0x12b   : > { %p4137_p2 = por %p4136_p0, %p4135_p13 }
 0x12c   : > { %p4131_p12 = pneg %p4130_p11 }
 0x12e   : > { %p4138_p4 = pnand %p4137_p2, %p4131_p12 }
 0x130   : > { %4141 = shalt.err (!%p4138_p4)
}
 0x131   : > { %3687 = dma.hbm_to_vmem [thread:$0]  (!%p4904_p5), %s5910_s19, 16, %s779_s12, [#allocation33]  }
 0x132   : > { %s3249_s23 = sadd.s32 4294967294, %s4682_s6   ;;  %s60_s10 = sadd.s32 1, %s4674_s5 }
 0x133   : > { %s63_s28 = sadd.s32 1, %s4678_s24  ;;  %p61_p6 = scmp.ge.s32.totalorder %s60_s10, 2 }
 0x134   : > { %s72_s29 = sadd.s32 1, %s4662_s0  ;;  %p79_p8 = scmp.ne.s32.totalorder %s4662_s0, %s4658_s4 }
 0x135   : > { %p5842_p9 = scmp.eq.s32.totalorder %s4682_s6, 0  ;;  %s5995_s10 = smov (%p61_p6, %s60_s10), 0 }
 0x136   : > { %5911 = sst [smem:[#allocation61_spill]] %s5995_s10  ;;  %s5997_s28 = smov (!%p61_p6, %s63_s28), %s4678_s24 }
 0x137   : > { %s68_s14 = ssub.s32 %s4674_s5, %s5995_s10  ;;  %p5106_p1 = por %p5842_p9, %p79_p8 }
 0x138   : > { %p65_p3 = scmp.ge.s32.totalorder %s5997_s28, 2  ;;  %p85_p10 = scmp.ne.s32.totalorder %s4658_s4, %s4654_s30 }
 0x139   : > { %p564_p11 = scmp.eq.s32.totalorder %s4891_s25, 3  ;;  %p570_p12 = scmp.eq.s32.totalorder %s3249_s23, 3 }
 0x13a   : > { %s5999_s28 = smov (%p65_p3, %s5997_s28), 0  ;;  %p5914_p13 = scmp.eq.s32.totalorder %s4891_s25, 0 }
 0x13b   : > { %5913 = sst [smem:[#allocation62_spill]] %s5999_s28  ;;  %p5121_p2 = por %p564_p11, %p79_p8 }
 0x13c   : > { %p5117_p0 = por %p5914_p13, %p85_p10  ;;  %s5127_s18 = ssub.s32 %s4678_s24, %s5999_s28 }
 0x13d   : > { %s5916_s2 = scalar_select %p5121_p2, 1, 0 }
 0x13e   : > { %s5915_s20 = scalar_select %p5117_p0, 1, 0 }
 0x13f   : > { %p5129_p4 = por %p570_p12, %p85_p10  ;;  %s69_s27 = sor.u32 %s68_s14, %s5127_s18 }
 0x140   : > { %p70_p3 = scmp.eq.s32.totalorder %s69_s27, 0  ;;  %p5846_p9 = scmp.lt.s32.totalorder %s4682_s6, 4 }
 0x141   : > { %s5917_s21 = scalar_select %p5129_p4, 1, 0 }
 0x142   : > { %s5137_s16 = sand.u32 1, %s4662_s0   ;;  %s3272_s3 = sshll.u32 %s4678_s24, 1 }
 0x143   : > { %5918 = sst [smem:[#allocation63_spill]] %s5917_s21  ;;  %s5144_s7 = sadd.s32 %s4674_s5, %s3272_s3 }
 0x144   : > { %s5141_s23 = scalar_select %p70_p3, %s4662_s0, %s72_s29  }
 0x145   : > { %p5150_p8 = pnand %p5846_p9, %p5106_p1  ;;  %s831_s14 = sand.u32 1, %s4682_s6  }
 0x146   : > { %5919 = sst [smem:[#allocation64_spill]] %s5141_s23  ;;  %s3274_s27 = sshll.u32 %s5137_s16, 1 }
 0x147   : > { %s5920_s9 = scalar_select %p5150_p8, 1, 0 }
 0x148   : > { %s3276_s11 = sshll.u32 %s5144_s7, 5  ;;  %s5921_s17 = sld [smem:[#allocation66_spill]] }
 0x149   : > { %s835_s29 = scalar_lea.vmem [#allocation5], %s3274_s27  ;;  %s5164_s3 = scalar_lea.sflag [#allocation6], %s831_s14 }
 0x14a   : > { %s844_s12 = sshll.u32 %s835_s29, 4  ;;  %p5853_p10 = pneg %p5150_p8  ;;  %s5162_s12 = int_to_ptr.vmem [resolvable:$true] %s844_s12 }
 0x14e   : > { %s5160_s19 = scalar_lea.hbm %s5921_s17, %s3276_s11  ;;  %s4147_s15 = scalar_lea.hbm %s5921_s17, 128 }
 0x14f   : > { %s4142_s26 = scalar_lea.hbm %s5160_s19, 32  ;;  %p4148_p13 = scmp.lt.u32.totalorder %s5160_s19, %s5921_s17 }
 0x150   : > { %p4143_p1 = scmp.ne.s32.totalorder %s5160_s19, %s4142_s26  ;;  %p4149_p3 = scmp.lt.u32.totalorder %s4147_s15, %s4142_s26 }
 0x151   : > { %p4151_p6 = scmp.lt.u32.totalorder %s4142_s26, %s5160_s19 }
 0x152   : > { %p4145_p11 = pnand %p5853_p10, %p4143_p1  ;;  %p4150_p9 = por %p4149_p3, %p4148_p13 }
 0x154   : > { %p4146_p12 = pneg %p4145_p11  ;;  %p4152_p4 = por %p4151_p6, %p4150_p9 }
 0x156   : > { %p4153_p2 = pnand %p4152_p4, %p4146_p12 }
 0x158   : > { %4156 = shalt.err (!%p4153_p2)
}
 0x159   : > { %s4157_s14 = scalar_lea.vmem %s5162_s12, 32  ;;  %s4693_s27 = smov [#allocation5]  }
 0x15a   : > { %p4158_p1 = scmp.ne.s32.totalorder %s5162_s12, %s4157_s14  ;;  %s4162_s29 = sshll.u32 %s4693_s27, 4  ;;  %s4163_s29 = int_to_ptr.vmem [resolvable:$false] %s4162_s29 }
 0x15b   : > { %s4164_s10 = scalar_lea.vmem %s4163_s29, 64  ;;  %p4165_p5 = scmp.lt.s32.totalorder %s5162_s12, %s4163_s29 }
 0x15c   : > { %p4160_p11 = pnand %p4158_p1, %p5853_p10  ;;  %p4166_p13 = scmp.lt.s32.totalorder %s4164_s10, %s4157_s14 }
 0x15e   : > { %p4161_p0 = pneg %p4160_p11  ;;  %p4167_p3 = por %p4166_p13, %p4165_p5 }
 0x160   : > { %p4168_p9 = pnand %p4167_p3, %p4161_p0 }
 0x162   : > { %4171 = shalt.err (!%p4168_p9)
}
 0x163   : > { %3700 = dma.hbm_to_vmem [thread:$0]  (!%p5150_p8), %s5160_s19, 32, %s5162_s12, %s5164_s3  }
 0x164   : > { %s4694_s26 = smov [#allocation10]   ;;  %s4695_s11 = smov [#allocation13]  }
 0x165   : > { %s601_s28 = sshll.u32 %s4694_s26, 4  ;;  %s622_s13 = sshll.u32 %s4695_s11, 4  ;;  %s602_s28 = int_to_ptr.vmem [resolvable:$true] %s601_s28  ;;  %s623_s13 = int_to_ptr.vmem [resolvable:$true] %s622_s13 }
 0x166   : > { %s5922_s17 = sld [smem:[#allocation69_spill]] }
 0x16c   : > { %s4172_s29 = scalar_lea.hbm %s5922_s17, 16 }
 0x16d   : > { %p4173_p5 = scmp.ne.s32.totalorder %s5922_s17, %s4172_s29  ;;  %p4179_p4 = scmp.lt.u32.totalorder %s4172_s29, %s5922_s17 }
 0x16f   : > { %p4175_p0 = pnand %p4173_p5, %p4920_p7 }
 0x171   : > { %p4176_p2 = pneg %p4175_p0 }
 0x173   : > { %p4181_p6 = pnand %p4179_p4, %p4176_p2 }
 0x175   : > { %4184 = shalt.err (!%p4181_p6)
}
 0x176   : > { %s4185_s19 = scalar_lea.vmem %s602_s28, 16  ;;  %s4192_s12 = scalar_lea.vmem %s602_s28, 32 }
 0x177   : > { %p4186_p12 = scmp.ne.s32.totalorder %s602_s28, %s4185_s19  ;;  %p4193_p13 = scmp.lt.s32.totalorder %s602_s28, %s602_s28 }
 0x178   : > { %p4194_p3 = scmp.lt.s32.totalorder %s4192_s12, %s4185_s19 }
 0x179   : > { %p4188_p1 = pnand %p4186_p12, %p4920_p7 }
 0x17a   : > { %p4195_p9 = por %p4194_p3, %p4193_p13 }
 0x17b   : > { %p4189_p11 = pneg %p4188_p1 }
 0x17d   : > { %p4196_p10 = pnand %p4195_p9, %p4189_p11 }
 0x17f   : > { %4199 = shalt.err (!%p4196_p10)
}
 0x180   : > { %p5923_p5 = scmp.ne.s32.totalorder %s5900_s1, 0  ;;  %s5924_s15 = sld [smem:[#allocation71_spill]] }
 0x182   : > { %3642 = dma.hbm_to_vmem [thread:$0]  (!%p5923_p5), %s5922_s17, 16, %s602_s28, [#allocation9]  }
 0x186   : > { %s4200_s27 = scalar_lea.hbm %s5924_s15, 512 }
 0x187   : > { %p4201_p0 = scmp.ne.s32.totalorder %s5924_s15, %s4200_s27  ;;  %p4207_p10 = scmp.lt.u32.totalorder %s4200_s27, %s5924_s15 }
 0x189   : > { %p4203_p2 = pnand %p4201_p0, %p4920_p7 }
 0x18b   : > { %p4204_p4 = pneg %p4203_p2 }
 0x18d   : > { %p4209_p6 = pnand %p4207_p10, %p4204_p4 }
 0x18f   : > { %4212 = shalt.err (!%p4209_p6)
}
 0x190   : > { %s4213_s12 = scalar_lea.vmem %s623_s13, 512  ;;  %p4221_p13 = scmp.lt.s32.totalorder %s623_s13, %s623_s13 }
 0x191   : > { %p4214_p12 = scmp.ne.s32.totalorder %s623_s13, %s4213_s12  ;;  %p4222_p3 = scmp.lt.s32.totalorder %s4213_s12, %s4213_s12 }
 0x193   : > { %p4216_p1 = pnand %p4214_p12, %p4920_p7  ;;  %p4223_p9 = por %p4222_p3, %p4221_p13 }
 0x195   : > { %p4217_p11 = pneg %p4216_p1 }
 0x197   : > { %p4224_p8 = pnand %p4223_p9, %p4217_p11 }
 0x199   : > { %4227 = shalt.err (!%p4224_p8)
}
 0x19a   : > { %s5861_s28 = smov 128   ;;  %s4697_s26 = smov 8  }
 0x19b   : > { %3648 = dma.hbm_to_vmem [thread:$0]  (!%p5923_p5), %s5924_s15, 512, %s623_s13, [#allocation12], %s5861_s28, %s5861_s28, %s4697_s26  }
 0x19c   : > { %s4698_s23 = smov [#allocation16]   ;;  %s4699_s29 = smov [#allocation19]  }
 0x19d   : > { %s646_s27 = sshll.u32 %s4698_s23, 4  ;;  %s670_s14 = sshll.u32 %s4699_s29, 4  ;;  %s647_s27 = int_to_ptr.vmem [resolvable:$true] %s646_s27  ;;  %s671_s14 = int_to_ptr.vmem [resolvable:$true] %s670_s14 }
 0x19e   : > { %s5925_s8 = sld [smem:[#allocation73_spill]] }
 0x1a4   : > { %s4228_s12 = scalar_lea.hbm %s5925_s8, 512 }
 0x1a5   : > { %p4229_p8 = scmp.ne.s32.totalorder %s5925_s8, %s4228_s12  ;;  %p4235_p4 = scmp.lt.u32.totalorder %s4228_s12, %s5925_s8 }
 0x1a7   : > { %p4231_p0 = pnand %p4229_p8, %p4920_p7 }
 0x1a9   : > { %p4232_p2 = pneg %p4231_p0 }
 0x1ab   : > { %p4237_p10 = pnand %p4235_p4, %p4232_p2 }
 0x1ad   : > { %4240 = shalt.err (!%p4237_p10)
}
 0x1ae   : > { %s4241_s13 = scalar_lea.vmem %s647_s27, 512  ;;  %p4249_p11 = scmp.lt.s32.totalorder %s647_s27, %s647_s27 }
 0x1af   : > { %p4242_p6 = scmp.ne.s32.totalorder %s647_s27, %s4241_s13  ;;  %p4250_p13 = scmp.lt.s32.totalorder %s4241_s13, %s4241_s13 }
 0x1b1   : > { %p4244_p12 = pnand %p4242_p6, %p4920_p7  ;;  %p4251_p3 = por %p4250_p13, %p4249_p11 }
 0x1b3   : > { %p4245_p1 = pneg %p4244_p12 }
 0x1b5   : > { %p4252_p9 = pnand %p4251_p3, %p4245_p1 }
 0x1b7   : > { %4255 = shalt.err (!%p4252_p9)
}
 0x1b8   : > { %3654 = dma.hbm_to_vmem [thread:$0]  (!%p5923_p5), %s5925_s8, 512, %s647_s27, [#allocation15], %s5861_s28, %s5861_s28, %s4697_s26  }
 0x1b9   : > { %s5926_s11 = sld [smem:[#allocation75_spill]] }
 0x1bf   : > { %s4256_s5 = scalar_lea.hbm %s5926_s11, 512 }
 0x1c0   : > { %p4257_p8 = scmp.ne.s32.totalorder %s5926_s11, %s4256_s5  ;;  %p4263_p4 = scmp.lt.u32.totalorder %s4256_s5, %s5926_s11 }
 0x1c2   : > { %p4259_p0 = pnand %p4257_p8, %p4920_p7 }
 0x1c4   : > { %p4260_p2 = pneg %p4259_p0 }
 0x1c6   : > { %p4265_p10 = pnand %p4263_p4, %p4260_p2 }
 0x1c8   : > { %4268 = shalt.err (!%p4265_p10)
}
 0x1c9   : > { %s4269_s12 = scalar_lea.vmem %s671_s14, 512  ;;  %p4277_p11 = scmp.lt.s32.totalorder %s671_s14, %s671_s14 }
 0x1ca   : > { %p4270_p6 = scmp.ne.s32.totalorder %s671_s14, %s4269_s12  ;;  %p4278_p13 = scmp.lt.s32.totalorder %s4269_s12, %s4269_s12 }
 0x1cc   : > { %p4272_p12 = pnand %p4270_p6, %p4920_p7  ;;  %p4279_p3 = por %p4278_p13, %p4277_p11 }
 0x1ce   : > { %p4273_p1 = pneg %p4272_p12 }
 0x1d0   : > { %p4280_p9 = pnand %p4279_p3, %p4273_p1 }
 0x1d2   : > { %4283 = shalt.err (!%p4280_p9)
}
 0x1d3   : > { %3660 = dma.hbm_to_vmem [thread:$0]  (!%p5923_p5), %s5926_s11, 512, %s671_s14, [#allocation18], %s5861_s28, %s5861_s28, %s4697_s26  }
 0x1d4   : > { %s4700_s17 = smov [#allocation22]   ;;  %s4701_s0 = smov [#allocation25]  }
 0x1d5   : > { %s694_s30 = sshll.u32 %s4700_s17, 4  ;;  %s719_s21 = sshll.u32 %s4701_s0, 4  ;;  %s695_s30 = int_to_ptr.vmem [resolvable:$true] %s694_s30  ;;  %s720_s21 = int_to_ptr.vmem [resolvable:$true] %s719_s21 }
 0x1d6   : > { %s5927_s29 = sld [smem:[#allocation77_spill]] }
 0x1dc   : > { %s5928_s10 = smov %s5927_s29  ;;  %s4284_s19 = scalar_lea.hbm %s5927_s29, 512 }
 0x1dd   : > { %p4285_p8 = scmp.ne.s32.totalorder %s5928_s10, %s4284_s19  ;;  %p4291_p4 = scmp.lt.u32.totalorder %s4284_s19, %s5928_s10 }
 0x1df   : > { %p4287_p0 = pnand %p4285_p8, %p4920_p7 }
 0x1e1   : > { %p4288_p2 = pneg %p4287_p0 }
 0x1e3   : > { %p4293_p10 = pnand %p4291_p4, %p4288_p2 }
 0x1e5   : > { %4296 = shalt.err (!%p4293_p10)
}
 0x1e6   : > { %s4297_s14 = scalar_lea.vmem %s695_s30, 512  ;;  %p4305_p11 = scmp.lt.s32.totalorder %s695_s30, %s695_s30 }
 0x1e7   : > { %p4298_p6 = scmp.ne.s32.totalorder %s695_s30, %s4297_s14  ;;  %p4306_p13 = scmp.lt.s32.totalorder %s4297_s14, %s4297_s14 }
 0x1e9   : > { %p4300_p12 = pnand %p4298_p6, %p4920_p7  ;;  %p4307_p3 = por %p4306_p13, %p4305_p11 }
 0x1eb   : > { %p4301_p1 = pneg %p4300_p12 }
 0x1ed   : > { %p4308_p9 = pnand %p4307_p3, %p4301_p1 }
 0x1ef   : > { %4311 = shalt.err (!%p4308_p9)
}
 0x1f0   : > { %3666 = dma.hbm_to_vmem [thread:$0]  (!%p5923_p5), %s5928_s10, 512, %s695_s30, [#allocation21], %s5861_s28, %s5861_s28, %s4697_s26  }
 0x1f1   : > { %s5929_s0 = sld [smem:[#allocation79_spill]] }
 0x1f7   : > { %s5930_s19 = smov %s5929_s0  ;;  %s4312_s5 = scalar_lea.hbm %s5929_s0, 16 }
 0x1f8   : > { %p4313_p8 = scmp.ne.s32.totalorder %s5930_s19, %s4312_s5  ;;  %p4319_p4 = scmp.lt.u32.totalorder %s4312_s5, %s5930_s19 }
 0x1fa   : > { %p4315_p0 = pnand %p4313_p8, %p4920_p7 }
 0x1fc   : > { %p4316_p2 = pneg %p4315_p0 }
 0x1fe   : > { %p4321_p10 = pnand %p4319_p4, %p4316_p2 }
 0x200   : > { %4324 = shalt.err (!%p4321_p10)
}
 0x201   : > { %s4325_s14 = scalar_lea.vmem %s720_s21, 16  ;;  %s4332_s30 = scalar_lea.vmem %s720_s21, 32 }
 0x202   : > { %p4326_p6 = scmp.ne.s32.totalorder %s720_s21, %s4325_s14  ;;  %p4333_p11 = scmp.lt.s32.totalorder %s720_s21, %s720_s21 }
 0x203   : > { %p4334_p13 = scmp.lt.s32.totalorder %s4332_s30, %s4325_s14 }
 0x204   : > { %p4328_p12 = pnand %p4326_p6, %p4920_p7 }
 0x205   : > { %p4335_p3 = por %p4334_p13, %p4333_p11 }
 0x206   : > { %p4329_p1 = pneg %p4328_p12 }
 0x208   : > { %p4336_p9 = pnand %p4335_p3, %p4329_p1 }
 0x20a   : > { %4339 = shalt.err (!%p4336_p9)
}
 0x20b   : > { %3672 = dma.hbm_to_vmem [thread:$0]  (!%p5923_p5), %s5930_s19, 16, %s720_s21, [#allocation24]  }
 0x20c   : > { %s4702_s13 = smov [#allocation28]   ;;  %s4703_s0 = smov [#allocation31]  }
 0x20d   : > { %s740_s17 = sshll.u32 %s4702_s13, 4  ;;  %s764_s5 = sshll.u32 %s4703_s0, 4  ;;  %s741_s17 = int_to_ptr.vmem [resolvable:$true] %s740_s17  ;;  %s765_s5 = int_to_ptr.vmem [resolvable:$true] %s764_s5 }
 0x20e   : > { %s5931_s12 = sld [smem:[#allocation81_spill]] }
 0x214   : > { %s4340_s27 = scalar_lea.hbm %s5931_s12, 512 }
 0x215   : > { %p4341_p8 = scmp.ne.s32.totalorder %s5931_s12, %s4340_s27  ;;  %p4347_p4 = scmp.lt.u32.totalorder %s4340_s27, %s5931_s12 }
 0x217   : > { %p4343_p0 = pnand %p4341_p8, %p4920_p7 }
 0x219   : > { %p4344_p2 = pneg %p4343_p0 }
 0x21b   : > { %p4349_p10 = pnand %p4347_p4, %p4344_p2 }
 0x21d   : > { %4352 = shalt.err (!%p4349_p10)
}
 0x21e   : > { %s4353_s21 = scalar_lea.vmem %s741_s17, 512  ;;  %p4361_p11 = scmp.lt.s32.totalorder %s741_s17, %s741_s17 }
 0x21f   : > { %p4354_p6 = scmp.ne.s32.totalorder %s741_s17, %s4353_s21  ;;  %p4362_p13 = scmp.lt.s32.totalorder %s4353_s21, %s4353_s21 }
 0x221   : > { %p4356_p12 = pnand %p4354_p6, %p4920_p7  ;;  %p4363_p3 = por %p4362_p13, %p4361_p11 }
 0x223   : > { %p4357_p1 = pneg %p4356_p12 }
 0x225   : > { %p4364_p9 = pnand %p4363_p3, %p4357_p1 }
 0x227   : > { %4367 = shalt.err (!%p4364_p9)
}
 0x228   : > { %s5932_s15 = smov 128   ;;  %s5933_s29 = sld [smem:[#allocation83_spill]] }
 0x229   : > { %3678 = dma.hbm_to_vmem [thread:$0]  (!%p5923_p5), %s5931_s12, 512, %s741_s17, [#allocation27], %s5932_s15, %s5932_s15, %s4697_s26  }
 0x22e   : > { %s5934_s27 = smov %s5933_s29  ;;  %s4368_s14 = scalar_lea.hbm %s5933_s29, 1024 }
 0x22f   : > { %p4369_p8 = scmp.ne.s32.totalorder %s5934_s27, %s4368_s14  ;;  %p4375_p4 = scmp.lt.u32.totalorder %s4368_s14, %s5934_s27 }
 0x231   : > { %p4371_p0 = pnand %p4369_p8, %p4920_p7 }
 0x233   : > { %p4372_p2 = pneg %p4371_p0 }
 0x235   : > { %p4377_p10 = pnand %p4375_p4, %p4372_p2 }
 0x237   : > { %4380 = shalt.err (!%p4377_p10)
}
 0x238   : > { %s4381_s28 = scalar_lea.vmem %s765_s5, 1024  ;;  %p4389_p11 = scmp.lt.s32.totalorder %s765_s5, %s765_s5 }
 0x239   : > { %p4382_p6 = scmp.ne.s32.totalorder %s765_s5, %s4381_s28  ;;  %p4390_p13 = scmp.lt.s32.totalorder %s4381_s28, %s4381_s28 }
 0x23b   : > { %p4384_p12 = pnand %p4382_p6, %p4920_p7  ;;  %p4391_p3 = por %p4390_p13, %p4389_p11 }
 0x23d   : > { %p4385_p1 = pneg %p4384_p12 }
 0x23f   : > { %p4392_p9 = pnand %p4391_p3, %p4385_p1 }
 0x241   : > { %4395 = shalt.err (!%p4392_p9)
}
 0x242   : > { %3684 = dma.hbm_to_vmem [thread:$0]  (!%p5923_p5), %s5934_s27, 1024, %s765_s5, [#allocation30], %s5932_s15, %s5932_s15, %s4697_s26  }
 0x243   : > { %s4704_s13 = smov [#allocation34]   ;;  %s4705_s23 = smov [#allocation35]  }
 0x244   : > { %s789_s0 = sshll.u32 %s4704_s13, 4  ;;  %s800_s29 = sshll.u32 %s4705_s23, 4  ;;  %s790_s0 = int_to_ptr.vmem [resolvable:$true] %s789_s0  ;;  %s801_s29 = int_to_ptr.vmem [resolvable:$true] %s800_s29 }
 0x245   : > { %s5935_s8 = sld [smem:[#allocation85_spill]] }
 0x24b   : > { %s4396_s21 = scalar_lea.hbm %s5935_s8, 16 }
 0x24c   : > { %p4397_p8 = scmp.ne.s32.totalorder %s5935_s8, %s4396_s21  ;;  %p4403_p4 = scmp.lt.u32.totalorder %s4396_s21, %s5935_s8 }
 0x24e   : > { %p4399_p0 = pnand %p4397_p8, %p4920_p7 }
 0x250   : > { %p4400_p2 = pneg %p4399_p0 }
 0x252   : > { %p4405_p10 = pnand %p4403_p4, %p4400_p2 }
 0x254   : > { %4408 = shalt.err (!%p4405_p10)
}
 0x255   : > { %s4409_s26 = scalar_lea.vmem %s790_s0, 16  ;;  %s4416_s5 = scalar_lea.vmem %s790_s0, 32 }
 0x256   : > { %p4410_p6 = scmp.ne.s32.totalorder %s790_s0, %s4409_s26  ;;  %p4417_p11 = scmp.lt.s32.totalorder %s790_s0, %s790_s0 }
 0x257   : > { %p4418_p13 = scmp.lt.s32.totalorder %s4416_s5, %s4409_s26 }
 0x258   : > { %p4412_p12 = pnand %p4410_p6, %p4920_p7 }
 0x259   : > { %p4419_p3 = por %p4418_p13, %p4417_p11 }
 0x25a   : > { %p4413_p1 = pneg %p4412_p12 }
 0x25c   : > { %p4420_p9 = pnand %p4419_p3, %p4413_p1 }
 0x25e   : > { %4423 = shalt.err (!%p4420_p9)
}
 0x25f   : > { %3690 = dma.hbm_to_vmem [thread:$0]  (!%p5923_p5), %s5935_s8, 16, %s790_s0, [#allocation33]  }
 0x260   : > { %s5936_s13 = sld [smem:[#allocation86_spill]] }
 0x266   : > { %s4424_s23 = scalar_lea.hbm %s5936_s13, 16 }
 0x267   : > { %p4425_p8 = scmp.ne.s32.totalorder %s5936_s13, %s4424_s23  ;;  %p4431_p4 = scmp.lt.u32.totalorder %s4424_s23, %s5936_s13 }
 0x269   : > { %p4427_p0 = pnand %p4425_p8, %p4920_p7 }
 0x26b   : > { %p4428_p2 = pneg %p4427_p0 }
 0x26d   : > { %p4433_p10 = pnand %p4431_p4, %p4428_p2 }
 0x26f   : > { %4436 = shalt.err (!%p4433_p10)
}
 0x270   : > { %s4437_s10 = scalar_lea.vmem %s801_s29, 16  ;;  %s4444_s0 = scalar_lea.vmem %s801_s29, 32 }
 0x271   : > { %p4438_p6 = scmp.ne.s32.totalorder %s801_s29, %s4437_s10  ;;  %p4445_p11 = scmp.lt.s32.totalorder %s801_s29, %s801_s29 }
 0x272   : > { %p4446_p13 = scmp.lt.s32.totalorder %s4444_s0, %s4437_s10 }
 0x273   : > { %p4440_p12 = pnand %p4438_p6, %p4920_p7 }
 0x274   : > { %p4447_p3 = por %p4446_p13, %p4445_p11 }
 0x275   : > { %p4441_p1 = pneg %p4440_p12 }
 0x277   : > { %p4448_p9 = pnand %p4447_p3, %p4441_p1 }
 0x279   : > { %4451 = shalt.err (!%p4448_p9)
}
 0x27a   : > { %3693 = dma.hbm_to_vmem [thread:$0]  (!%p5923_p5), %s5936_s13, 16, %s801_s29, [#allocation36]  }
 0x27b   : > { %s3271_s11 = sshll.u32 %s5137_s16, 3  ;;  %s3273_s22 = sshll.u32 %s5144_s7, 7 }
 0x27c   : > { %s5937_s17 = sld [smem:[#allocation65_spill]]  ;;  %s815_s1 = scalar_lea.vmem [#allocation2], %s3271_s11 }
 0x27d   : > { %s824_s14 = sshll.u32 %s815_s1, 4  ;;  %s812_s30 = scalar_lea.sflag [#allocation3], %s5137_s16  ;;  %s825_s14 = int_to_ptr.vmem [resolvable:$true] %s824_s14 }
 0x27e   : > { %p5938_p8 = scmp.ne.s32.totalorder %s5920_s9, 0 }
 0x280   : > { %p5939_p0 = pneg %p5938_p8 }
 0x282   : > { %s5395_s23 = scalar_lea.hbm %s5937_s17, %s3273_s22  ;;  %s4457_s28 = scalar_lea.hbm %s5937_s17, 512 }
 0x283   : > { %s4452_s21 = scalar_lea.hbm %s5395_s23, 128  ;;  %p4458_p4 = scmp.lt.u32.totalorder %s5395_s23, %s5937_s17 }
 0x284   : > { %p4453_p7 = scmp.ne.s32.totalorder %s5395_s23, %s4452_s21  ;;  %p4459_p10 = scmp.lt.u32.totalorder %s4457_s28, %s4452_s21 }
 0x285   : > { %p4461_p12 = scmp.lt.u32.totalorder %s4452_s21, %s5395_s23 }
 0x286   : > { %p4455_p5 = pnand %p4453_p7, %p5939_p0  ;;  %p4460_p6 = por %p4459_p10, %p4458_p4 }
 0x288   : > { %p4456_p2 = pneg %p4455_p5  ;;  %p4462_p1 = por %p4461_p12, %p4460_p6 }
 0x28a   : > { %p4463_p11 = pnand %p4462_p1, %p4456_p2 }
 0x28c   : > { %4466 = shalt.err (!%p4463_p11)
}
 0x28d   : > { %s4467_s16 = scalar_lea.vmem %s825_s14, 128  ;;  %p5940_p3 = pmov %p5939_p0 }
 0x28e   : > { %p4468_p13 = scmp.ne.s32.totalorder %s825_s14, %s4467_s16  ;;  %s4706_s26 = smov [#allocation2]  }
 0x28f   : > { %s4472_s5 = sshll.u32 %s4706_s26, 4  ;;  %s4473_s5 = int_to_ptr.vmem [resolvable:$false] %s4472_s5 }
 0x290   : > { %p4470_p9 = pnand %p4468_p13, %p5940_p3  ;;  %s4474_s11 = scalar_lea.vmem %s4473_s5, 256 }
 0x291   : > { %p4475_p0 = scmp.lt.s32.totalorder %s825_s14, %s4473_s5  ;;  %p4476_p5 = scmp.lt.s32.totalorder %s4474_s11, %s4467_s16 }
 0x292   : > { %p4471_p7 = pneg %p4470_p9 }
 0x293   : > { %p4477_p4 = por %p4476_p5, %p4475_p0 }
 0x295   : > { %p4478_p10 = pnand %p4477_p4, %p4471_p7 }
 0x297   : > { %4481 = shalt.err (!%p4478_p10)
}
 0x298   : > { %s5941_s22 = sld [smem:[#allocation54_spill]]  ;;  %s5942_s15 = sld [smem:[#allocation53_spill]] }
 0x299   : > { %s5943_s12 = sld [smem:[#allocation52_spill]]  ;;  %p5944_p6 = scmp.eq.s32.totalorder %s5127_s18, 0 }
 0x29a   : > { %3697 = dma.hbm_to_vmem [thread:$0]  (!%p5938_p8), %s5395_s23, 128, %s825_s14, %s812_s30  }
 0x29b   : > { %p5945_p12 = scmp.eq.s32.totalorder %s4682_s6, 0  ;;  %s3278_s7 = sshll.u32 %s4678_s24, 7 }
 0x29c   : > { %p5946_p13 = scmp.eq.s32.totalorder %s4891_s25, 0  ;;  %s5948_s16 = sld [smem:[#allocation67_spill]] }
 0x29d   : > { %p5949_p8 = scmp.lt.s32.totalorder %s4682_s6, 4 }
 0x29e   : > { %s126_s1 = sadd.s32 1, %s5941_s22  ;;  %p133_p2 = scmp.ne.s32.totalorder %s5941_s22, %s5942_s15 }
 0x29f   : > { %s5423_s21 = scalar_select %p5944_p6, %s5941_s22, %s126_s1  }
 0x2a0   : > { %p135_p1 = por %p133_p2, %p5945_p12  ;;  %p139_p11 = scmp.ne.s32.totalorder %s5942_s15, %s5943_s12 }
 0x2a1   : > { %s853_s9 = sand.u32 1, %s5941_s22  }
 0x2a2   : > { %p5433_p3 = por %p139_p11, %p5946_p13  ;;  %s3277_s28 = sshll.u32 %s853_s9, 3 }
 0x2a3   : > { %s5440_s23 = scalar_lea.hbm %s5948_s16, %s3278_s7  ;;  %s855_s18 = scalar_lea.vmem [#allocation7], %s3277_s28 }
 0x2a4   : > { %s5947_s29 = scalar_select %p5433_p3, 1, 0 }
 0x2a5   : > { %s862_s14 = sshll.u32 %s855_s18, 4  ;;  %p5444_p9 = pnand %p5949_p8, %p135_p1  ;;  %s863_s14 = int_to_ptr.vmem [resolvable:$true] %s862_s14 }
 0x2a6   : > { %s4482_s26 = scalar_lea.hbm %s5440_s23, 128  ;;  %s4487_s22 = scalar_lea.hbm %s5948_s16, 256 }
 0x2a7   : > { %p4483_p7 = scmp.ne.s32.totalorder %s5440_s23, %s4482_s26  ;;  %p4484_p0 = pneg %p5444_p9 }
 0x2a8   : > { %p4488_p10 = scmp.lt.u32.totalorder %s5440_s23, %s5948_s16  ;;  %p4489_p2 = scmp.lt.u32.totalorder %s4487_s22, %s4482_s26 }
 0x2a9   : > { %p4485_p5 = pnand %p4484_p0, %p4483_p7  ;;  %p4491_p12 = scmp.lt.u32.totalorder %s4482_s26, %s5440_s23 }
 0x2aa   : > { %p4490_p6 = por %p4489_p2, %p4488_p10 }
 0x2ab   : > { %p4486_p4 = pneg %p4485_p5 }
 0x2ac   : > { %p4492_p1 = por %p4491_p12, %p4490_p6 }
 0x2ae   : > { %p4493_p11 = pnand %p4492_p1, %p4486_p4 }
 0x2b0   : > { %4496 = shalt.err (!%p4493_p11)
}
 0x2b1   : > { %s4497_s1 = scalar_lea.vmem %s863_s14, 128  ;;  %s4707_s9 = smov [#allocation7]  }
 0x2b2   : > { %p4498_p13 = scmp.ne.s32.totalorder %s863_s14, %s4497_s1  ;;  %s4502_s7 = sshll.u32 %s4707_s9, 4  ;;  %s4503_s7 = int_to_ptr.vmem [resolvable:$false] %s4502_s7 }
 0x2b3   : > { %s4504_s28 = scalar_lea.vmem %s4503_s7, 256  ;;  %p4505_p5 = scmp.lt.s32.totalorder %s863_s14, %s4503_s7 }
 0x2b4   : > { %p4500_p8 = pnand %p4498_p13, %p4484_p0  ;;  %p4506_p3 = scmp.lt.s32.totalorder %s4504_s28, %s4497_s1 }
 0x2b6   : > { %p4501_p7 = pneg %p4500_p8  ;;  %p4507_p2 = por %p4506_p3, %p4505_p5 }
 0x2b8   : > { %p4508_p10 = pnand %p4507_p2, %p4501_p7 }
 0x2ba   : > { %4511 = shalt.err (!%p4508_p10)
}
 0x2bb   : > { %3703 = dma.hbm_to_vmem [thread:$0]  (!%p5444_p9), %s5440_s23, 128, %s863_s14, %s5164_s3  }
 0x2bc   : > { %s5951_s10 = sld [smem:[#allocation60_spill]] }
 0x2c2   : > { %p5952_p4 = scmp.ne.s32.totalorder %s5951_s10, 0 }
 0x2c3   : > { %s5473_s0 = sand.u32 (!%p5952_p4), 1, %s4658_s4   ;;  %p5953_p3 = scmp.ne.s32.totalorder (!%p5952_p4), %s5915_s20, 0 }
 0x2c4   : > { %871 = sbr.rel (%p5952_p4) target bundleno = 3652 (0xe44), region = 108  ;;  %s3280_s18 = sshll.u32 (!%p5952_p4), %s5473_s0, 3 }
 0x2c5   : > { %s874_s26 = scalar_lea.sflag (!%p5952_p4), [#allocation3], %s5473_s0  ;;  %s5479_s5 = scalar_lea.vmem (!%p5952_p4), [#allocation2], %s3280_s18 }
 0x2cb   : > { %4585 = dma.done.wait (%p5953_p3), %s874_s26, 128  }
 0x2cc   : > { %4587 = vsyncadd (%p5953_p3), %s874_s26, 4294967168  ;;  %s882_s3 = sand.u32 1, %s4891_s25   ;;  %s3281_s23 = sshll.u32 %s5473_s0, 1 }
 0x2cd   : > { %s883_s14 = scalar_lea.sflag [#allocation6], %s882_s3  ;;  %s5487_s30 = scalar_lea.vmem [#allocation5], %s3281_s23 }
 0x2ce   : > { %4589 = dma.done.wait (%p5953_p3), %s883_s14, 32  }
 0x2cf   : > { %4591 = vsyncadd (%p5953_p3), %s883_s14, 4294967264  ;;  %s5954_s11 = sld [smem:[#allocation53_spill]]  ;;  %p5955_p9 = scmp.ne.s32.totalorder %s5947_s29, 0 }
 0x2d5   : > { %s893_s22 = sand.u32 1, %s5954_s11  }
 0x2d6   : > { %s5494_s15 = sshll.u32 %s893_s22, 3 }
 0x2d7   : > { %s895_s12 = scalar_lea.vmem [#allocation7], %s5494_s15 }
 0x2d8   : > { %4593 = dma.done.wait (%p5955_p9), %s883_s14, 128  }
 0x2d9   : > { %4595 = vsyncadd (%p5955_p9), %s883_s14, 4294967168  ;;  %p5956_p0 = scmp.eq.s32.totalorder %s4891_s25, 0 }
 0x2db   : > { %4597 = dma.done.wait (%p5956_p0), [#allocation9], 80   ;;  %p5957_p6 = pmov %p5956_p0 }
 0x2dc   : > { %p5958_p12 = pmov %p5956_p0 }
 0x2dd   : > { %4599 = vsyncadd (%p5957_p6), [#allocation9], 4294967216 }
 0x2de   : > { %4601 = dma.done.wait (%p5958_p12), [#allocation12], 528   ;;  %p5959_p1 = pmov %p5956_p0 }
 0x2df   : > { %p5960_p11 = pmov %p5956_p0 }
 0x2e0   : > { %4603 = vsyncadd (%p5959_p1), [#allocation12], 4294966768 }
 0x2e1   : > { %4605 = dma.done.wait (%p5960_p11), [#allocation15], 528   ;;  %p5961_p13 = pmov %p5956_p0 }
 0x2e2   : > { %p5962_p8 = pmov %p5956_p0 }
 0x2e3   : > { %4607 = vsyncadd (%p5961_p13), [#allocation15], 4294966768 }
 0x2e4   : > { %4609 = dma.done.wait (%p5962_p8), [#allocation18], 528   ;;  %p5963_p7 = pmov %p5956_p0 }
 0x2e5   : > { %p5964_p5 = pmov %p5956_p0 }
 0x2e6   : > { %4611 = vsyncadd (%p5963_p7), [#allocation18], 4294966768 }
 0x2e7   : > { %4613 = dma.done.wait (%p5964_p5), [#allocation21], 528   ;;  %p5965_p2 = pmov %p5956_p0 }
 0x2e8   : > { %p5966_p10 = pmov %p5956_p0 }
 0x2e9   : > { %4615 = vsyncadd (%p5965_p2), [#allocation21], 4294966768 }
 0x2ea   : > { %4617 = dma.done.wait (%p5966_p10), [#allocation24], 32   ;;  %p5967_p4 = pmov %p5956_p0 }
 0x2eb   : > { %p5968_p3 = pmov %p5956_p0 }
 0x2ec   : > { %4619 = vsyncadd (%p5967_p4), [#allocation24], 4294967264 }
 0x2ed   : > { %4621 = dma.done.wait (%p5968_p3), [#allocation27], 528   ;;  %p5969_p9 = pmov %p5956_p0 }
 0x2ef   : > { %4623 = vsyncadd (%p5969_p9), [#allocation27], 4294966768 }
 0x2f0   : > { %4625 = dma.done.wait (%p5956_p0), [#allocation30], 1040   ;;  %p5970_p6 = pmov %p5956_p0 }
 0x2f1   : > { %p5971_p12 = pmov %p5956_p0 }
 0x2f2   : > { %4627 = vsyncadd (%p5970_p6), [#allocation30], 4294966256 }
 0x2f3   : > { %4629 = dma.done.wait (%p5971_p12), [#allocation33], 32   ;;  %p5972_p1 = pmov %p5956_p0 }
 0x2f4   : > { %p5973_p11 = pmov %p5956_p0 }
 0x2f5   : > { %4631 = vsyncadd (%p5972_p1), [#allocation33], 4294967264 }
 0x2f6   : > { %4633 = dma.done.wait (%p5973_p11), [#allocation36], 16   ;;  %p5974_p13 = pmov %p5956_p0 }
 0x2f7   : > { %v1050_v0 = vlaneseq  ;;  %v1042_v5 = vld [vmem:[%s5479_s5] sm:$0xff]  ;;  %v1043_v6 = vld [vmem:[%s5487_s30] sm:$0x3]  ;;  %vm1047_vm0 = vcmask 1041408   ;;  %vm1064_vm1 = vcmask 1046528   ;;  %vm1078_vm2 = vcmask 1045504  }
 0x2f8   : > { %4635 = vsyncadd (%p5974_p13), [#allocation36], 4294967280  ;;  %v1049_v7 = vld [vmem:[#allocation8] sm:$0x7]  ;;  %v1045_v8 = vrot.slane %v1042_v5, 6  ;;  %vm1087_vm3 = vcmask 261120  }
 0x2f9   : > { %v5541_v1 = vshrl.u32 %v1050_v0, 7  ;;  %v1117_v33 = vld [vmem:[#allocation13] sm:$0xff]  ;;  %v1118_v34 = vld [vmem:[#allocation13 + $0x8] sm:$0xff]  ;;  %v1119_v35 = vld [vmem:[#allocation13 + $0x10] sm:$0xff]  ;;  %v4708_v36 = vmov 0.0|0.0   ;;  %vm4709_vm4 = vmmov 0  }
 0x2fa   : > { %v1048_v12 = vsel %vm1047_vm0, %v1043_v6, %v1045_v8  ;;  %3510 = vmatprep.subr.bf16.mxu1 %v4708_v36  ;;  %v3511_v37 = vpack.c.bf16 %v1118_v34, %v1117_v33  ;;  %v1120_v38 = vld [vmem:[#allocation13 + $0x18] sm:$0xff]  ;;  %v4710_v39 = vmov 0.0   ;;  %3522 = vmatprep.subr.bf16.mxu0 %v4708_v36  ;;  %v1201_v47 = vld [vmem:[#allocation16] sm:$0xff]  ;;  %v1202_v48 = vld [vmem:[#allocation16 + $0x8] sm:$0xff]  ;;  %s4711_s25 = smov 104   ;;  %s4712_s20 = smov 120  }
 0x2fb   : > { %v1052_v2 = vsub.s32 0, %v5541_v1  ;;  %v1058_v3 = vsub.s32 1, %v5541_v1  ;;  %v1072_v4 = vsub.s32 2, %v5541_v1  ;;  %3404 = vmatprep.mubr.msk.f32.mxu1 %vm4709_vm4, %v4710_v39  ;;  %3426 = vmatprep.mubr.msk.f32.mxu0 %vm4709_vm4, %v4710_v39  ;;  %v3514_v40 = vpack.c.bf16 %v1120_v38, %v1119_v35  ;;  %v3303_v45 = vld [vmem:[#allocation10] ss:$0 sm:$0xff]  ;;  %v1203_v53 = vld [vmem:[#allocation16 + $0x10] sm:$0xff] }
 0x2fc   : > { %3512 = vmatpush3.bf16.msra.mxu1 %v3511_v37  ;;  %v3304_v49 = vld [vmem:[#allocation11] ss:$0 sm:$0xff]  ;;  %v3517_v51 = vpack.c.bf16 %v1202_v48, %v1201_v47  ;;  %v1116_v56 = vld [vmem:[%s895_s12] sm:$0xff]  ;;  %v3307_v62 = vld [vmem:[#allocation17] ss:$0 sm:$0xff]  ;;  %s4713_s29 = smov 112  }
 0x2fd   : > { %v1053_v9 = vrot.slane %v1049_v7, %v1052_v2  ;;  %v1059_v10 = vrot.slane %v1049_v7, %v1058_v3  ;;  %v1073_v11 = vrot.slane %v1049_v7, %v1072_v4  ;;  %3513 = vmatprep.subr.bf16.mxu1 %v4708_v36  ;;  %v1204_v54 = vld [vmem:[#allocation16 + $0x18] sm:$0xff]  ;;  %v1285_v59 = vld [vmem:[#allocation19] sm:$0xff]  ;;  %v1286_v60 = vld [vmem:[#allocation19 + $0x8] sm:$0xff]  ;;  %vm1804_vm5 = vcmask 64512   ;;  %s4716_s1 = smov 16   ;;  %s4717_s9 = smov 8  }
 0x2fe   : > { %v3520_v55 = vpack.c.bf16 %v1204_v54, %v1203_v53  ;;  %v3523_v61 = vpack.c.bf16 %v1286_v60, %v1285_v59  ;;  %v1287_v3 = vld [vmem:[#allocation19 + $0x10] sm:$0xff]  ;;  %v1288_v4 = vld [vmem:[#allocation19 + $0x18] sm:$0xff]  ;;  %s4718_s7 = smov 24   ;;  %vm2598_vm6 = vcmask 130048   ;;  %vm2600_vm7 = vcmask 195584   ;;  %s5975_s28 = sld [smem:[#allocation58_spill]] }
 0x2ff   : > { %v1061_v13 = vmul.f32 %v1059_v10, %v1045_v8  ;;  %v1075_v14 = vmul.f32 %v1073_v11, %v1045_v8  ;;  %v1060_v15 = vmul.f32 %v1059_v10, %v1048_v12  ;;  %v1074_v16 = vmul.f32 %v1073_v11, %v1048_v12  ;;  %v3305_v6 = vld [vmem:[#allocation14] ss:$0 sm:$0xff]  ;;  %s5976_s10 = sld [smem:[#allocation57_spill]]  ;;  %s1041_s23 = scalar_lea.vmem [#allocation37], %s3280_s18 }
 0x300   : > { %v1054_v17 = vmul.f32 %v1053_v9, %v1048_v12  ;;  %3515 = vmatpush3.bf16.msra.mxu1 %v3514_v40  ;;  %3524 = vmatpush3.bf16.msra.mxu0 %v3523_v61  ;;  %v4714_v8 = vmov 1983009808   ;;  %v4715_v10 = vmov 1934713408   ;;  %vm2816_vm8 = vcmask 523264   ;;  %s2937_s14 = sshll.u32 %s1041_s23, 4  ;;  %s5736_s14 = int_to_ptr.vmem [resolvable:$true] %s2937_s14 }
 0x301   : > { %v1066_v18 = vrot.slane %v1061_v13, 1  ;;  %v1080_v19 = vrot.slane %v1075_v14, 2  ;;  %v1065_v20 = vrot.slane %v1060_v15, 1  ;;  %v1079_v21 = vrot.slane %v1074_v16, 2  ;;  %3516 = vmatprep.subr.bf16.mxu1 %v4708_v36  ;;  %3525 = vmatprep.subr.bf16.mxu0 %v4708_v36  ;;  %s5977_s22 = sld [smem:[#allocation87_spill]]  ;;  %s2922_s12 = scalar_lea.sflag [#allocation4], %s5473_s0 }
 0x302   : > { %v1379_v9 = vunpack.c.l.s4 %v4714_v8  ;;  %v1411_v11 = vunpack.c.l.s4 %v4715_v10  ;;  %p5978_p7 = scmp.ne.s32.totalorder %s5916_s2, 0  ;;  %s4719_s18 = smov [#allocation37]  }
 0x303   : > { %v1067_v22 = vsel %vm1064_vm1, %v1065_v20, %v1066_v18  ;;  %v1081_v23 = vsel %vm1078_vm2, %v1079_v21, %v1080_v19 }
 0x304   : > { %v1069_v24 = vadd.f32 %v1067_v22, %v1054_v17  ;;  %v1380_v12 = vunpack.c.0.s8 %v1379_v9  ;;  %v1412_v15 = vunpack.c.0.s8 %v1411_v11  ;;  %s3342_s26 = sshll.u32 %s5975_s28, 1 }
 0x305   : > { %s2933_s5 = sadd.s32 %s5976_s10, %s3342_s26 }
 0x306   : > { %v1083_v25 = vadd.f32 %v1081_v23, %v1069_v24  ;;  %v5583_v16 = vsub.s32 %v1380_v12, %v5541_v1  ;;  %v5586_v22 = vsub.s32 %v1412_v15, %v5541_v1  ;;  %s3343_s3 = sshll.u32 %s2933_s5, 7 }
 0x307   : > { %s5734_s15 = scalar_lea.hbm %s5977_s22, %s3343_s3 }
 0x308   : > { %v1084_v26 = vadd.f32 %v1083_v25, %v1042_v5  ;;  %v3526_v5 = vpack.c.bf16 %v1288_v4, %v1287_v3 }
 0x30a   : > { %v1088_v27 = vsel %vm1087_vm3, %v1084_v26, 0.0  ;;  %3527 = vmatpush3.bf16.msra.mxu0 %v3526_v5 }
 0x30b   : > { %1089 = vadd.xlane.f32.xlu0 %v1088_v27  ;;  %3439 = vmatprep.subr.mxu0 %v4710_v39 }
 0x30d   : > { %3427 = vmatmul.mubr.msk.f32.vlgmr.msra.gmra.mrb[0].mxu0 %vm1087_vm3, %v1116_v56 }
 0x30e   : > { %3441 = vmatprep.mubr.msk.f32.mxu0 %vm4709_vm4, %v4710_v39 }
 0x398   : > { %v1090_v28 = vpop.xlane.xlu0 %1089 }
 0x399   : > { %v1092_v29 = vmul.f32 0.03125, %v1090_v28 }
 0x39b   : > { %v1093_v30 = vsub.f32 %v1084_v26, %v1092_v29 }
 0x39d   : > { %v1094_v31 = vmul.f32 %v1093_v30, %v1093_v30 }
 0x39f   : > { %v1095_v32 = vsel %vm1087_vm3, %v1094_v31, 0.0 }
 0x3a0   : > { %1096 = vadd.xlane.f32.xlu0 %v1095_v32 }
 0x42d   : > { %v1097_v41 = vpop.xlane.xlu0 %1096 }
 0x42e   : > { %v1098_v42 = vmul.f32 0.03125, %v1097_v41 }
 0x430   : > { %v1099_v43 = vadd.f32 1e-05, %v1098_v42 }
 0x432   : > { %3868 = vrsqrt.f32 %v1099_v43 }
 0x43c   : > { %v3869_v44 = vpop.eup %3868 }
 0x43d   : > { %v1101_v46 = vmul.f32 %v3869_v44, %v1093_v30 }
 0x43f   : > { %v1108_v50 = vmul.f32 %v3303_v45, %v1101_v46 }
 0x441   : > { %v5558_v52 = vadd.f32 %v3304_v49, %v1108_v50 }
 0x443   : > { %3405 = vmatmul.mubr.msk.f32.vlgmr.msra.gmra.mrb[0].mxu1 %vm1087_vm3, %v5558_v52 }
 0x444   : > { %3518 = vmatpush3.bf16.msra.mxu1 %v3517_v51  ;;  %3415 = vmatprep.mubr.msk.f32.mxu1 %vm4709_vm4, %v4710_v39 }
 0x445   : > { %3519 = vmatprep.subr.bf16.mxu1 %v4708_v36 }
 0x448   : > { %3521 = vmatpush3.bf16.msra.mxu1 %v3520_v55 }
 0x449   : > { %3429 = vmatprep.subr.mxu1 %v4710_v39 }
 0x44b   : > { %3416 = vmatmul.mubr.msk.f32.vlgmr.msra.gmra.mrb[2].mxu1 %vm1087_vm3, %v1116_v56 }
 0x44c   : > { %3431 = vmatprep.mubr.msk.f32.mxu1 %vm4709_vm4, %v4710_v39 }
 0x516   : > { %v1197_v57 = vpop.f32.mrb[0].mxu1 }
 0x517   : > { %v3406_v58 = vpop.f32.mrb[1].mxu1  ;;  %v1198_v7 = vadd.f32 %v3305_v6, %v1197_v57 }
 0x51e   : > { %v1281_v63 = vpop.f32.mrb[2].mxu1 }
 0x51f   : > { %v1282_v0 = vadd.f32 %v3307_v62, %v1281_v63  ;;  %v3417_v2 = vpop.f32.mrb[3].mxu1 }
 0x521   : > { %1519 = vrot.lane.b32.xlu0 %v1282_v0, %s4711_s25  ;;  %1513 = vrot.lane.b32.xlu1 %v1282_v0, %s4712_s20 }
 0x525   : > { %1516 = vrot.lane.b32.xlu1 %v1282_v0, %s4713_s29 }
 0x529   : > { %1367 = vrot.lane.b32.xlu1 %v1198_v7, %s4712_s20 }
 0x52d   : > { %1370 = vrot.lane.b32.xlu1 %v1198_v7, %s4713_s29 }
 0x531   : > { %1373 = vrot.lane.b32.xlu1 %v1198_v7, %s4711_s25 }
 0x593   : > { %v1520_v13 = vpop.permute.xlu0 %1519  ;;  %v1514_v14 = vpop.permute.xlu1 %1513 }
 0x594   : > { %v1538_v17 = vcombine.low %v1514_v14, %v1520_v13  ;;  %v1539_v18 = vcombine.high %v1514_v14, %v1520_v13 }
 0x596   : > { %v1546_v23 = vrot.slane %v1538_v17, %v5583_v16  ;;  %v1553_v24 = vrot.slane %v1539_v18, %v5583_v16 }
 0x597   : > { %v1517_v19 = vpop.permute.xlu1 %1516 }
 0x598   : > { %v1522_v20 = vcombine.low %v1282_v0, %v1517_v19  ;;  %v1523_v21 = vcombine.high %v1282_v0, %v1517_v19 }
 0x59a   : > { %v1530_v25 = vrot.slane %v1522_v20, %v5583_v16  ;;  %v1537_v26 = vrot.slane %v1523_v21, %v5583_v16 }
 0x59b   : > { %v1368_v27 = vpop.permute.xlu1 %1367 }
 0x59c   : > { %v1554_v28 = vcombine.low %v1530_v25, %v1546_v23  ;;  %v1555_v29 = vcombine.high %v1530_v25, %v1546_v23  ;;  %v1570_v30 = vcombine.low %v1537_v26, %v1553_v24  ;;  %v1571_v31 = vcombine.high %v1537_v26, %v1553_v24 }
 0x59e   : > { %v1562_v32 = vrot.slane %v1554_v28, %v5586_v22  ;;  %v1569_v33 = vrot.slane %v1555_v29, %v5586_v22  ;;  %v1578_v1 = vrot.slane %v1570_v30, %v5586_v22  ;;  %v1585_v34 = vrot.slane %v1571_v31, %v5586_v22 }
 0x59f   : > { %v1371_v35 = vpop.permute.xlu1 %1370 }
 0x5a0   : > { %v1590_v37 = vcombine.low %v1562_v32, %v1569_v33  ;;  %v3313_v38 = vcombine.high %v1562_v32, %v1569_v33  ;;  %v1606_v40 = vcombine.low %v1578_v1, %v1585_v34  ;;  %v3314_v41 = vcombine.high %v1578_v1, %v1585_v34  ;;  %v1362_v34 = vpop.f32.mrb[0].mxu0 }
 0x5a1   : > { %v1376_v46 = vcombine.low %v1198_v7, %v1371_v35  ;;  %v1377_v47 = vcombine.high %v1198_v7, %v1371_v35  ;;  %v3428_v35 = vpop.f32.mrb[1].mxu0 }
 0x5a2   : > { %v1597_v42 = vrot.slane %v1590_v37, %v5583_v16  ;;  %v1605_v43 = vrot.slane %v3313_v38, %v5583_v16  ;;  %v1613_v44 = vrot.slane %v1606_v40, %v5583_v16  ;;  %v1621_v45 = vrot.slane %v3314_v41, %v5583_v16 }
 0x5a3   : > { %v1374_v48 = vpop.permute.xlu1 %1373  ;;  %v1384_v60 = vrot.slane %v1376_v46, %v5583_v16  ;;  %v1391_v61 = vrot.slane %v1377_v47, %v5583_v16 }
 0x5a4   : > { %v1622_v49 = vcombine.low %v1597_v42, %v1605_v43  ;;  %v1623_v50 = vcombine.high %v1597_v42, %v1605_v43  ;;  %v1638_v51 = vcombine.low %v1613_v44, %v1621_v45  ;;  %v1639_v53 = vcombine.high %v1613_v44, %v1621_v45 }
 0x5a5   : > { %v1392_v54 = vcombine.low %v1368_v27, %v1374_v48  ;;  %v1393_v55 = vcombine.high %v1368_v27, %v1374_v48 }
 0x5a6   : > { %v1630_v56 = vrot.slane %v1622_v49, %v5586_v22  ;;  %v1646_v57 = vrot.slane %v1638_v51, %v5586_v22  ;;  %v1637_v58 = vrot.slane %v1623_v50, %v5586_v22  ;;  %v1653_v59 = vrot.slane %v1639_v53, %v5586_v22 }
 0x5a7   : > { %v1400_v62 = vrot.slane %v1392_v54, %v5583_v16  ;;  %v1407_v63 = vrot.slane %v1393_v55, %v5583_v16  ;;  %v3309_v55 = vld [vmem:[#allocation20] ss:$0 sm:$0xff] }
 0x5a8   : > { %v1654_v0 = vcombine.low %v1630_v56, %v1646_v57  ;;  %v1656_v2 = vcombine.low %v1637_v58, %v1653_v59  ;;  %v1655_v31 = vcombine.high %v1630_v56, %v1646_v57  ;;  %v1657_v33 = vcombine.high %v1637_v58, %v1653_v59 }
 0x5a9   : > { %v1408_v3 = vcombine.low %v1384_v60, %v1400_v62  ;;  %v1409_v4 = vcombine.high %v1384_v60, %v1400_v62  ;;  %v1424_v5 = vcombine.low %v1391_v61, %v1407_v63  ;;  %v1425_v6 = vcombine.high %v1391_v61, %v1407_v63 }
 0x5aa   : > { %3430 = vmatpush3.xpose.msk.msra.mxu1 %vm1804_vm5, %v1654_v0  ;;  %3440 = vmatpush3.xpose.msk.msra.mxu0 %vm1804_vm5, %v1656_v2  ;;  %v1363_v56 = vadd.f32 %v3309_v55, %v1362_v34 }
 0x5ab   : > { %v1416_v7 = vrot.slane %v1408_v3, %v5586_v22  ;;  %v1423_v8 = vrot.slane %v1409_v4, %v5586_v22  ;;  %v1432_v9 = vrot.slane %v1424_v5, %v5586_v22  ;;  %v1439_v10 = vrot.slane %v1425_v6, %v5586_v22  ;;  %3434 = vmatprep.subr.mxu1 %v4710_v39 }
 0x5ac   : > { %3449 = vmatprep.subr.mxu0 %v4710_v39 }
 0x5ad   : > { %v1444_v11 = vcombine.low %v1416_v7, %v1423_v8  ;;  %v3311_v12 = vcombine.high %v1416_v7, %v1423_v8  ;;  %v1460_v13 = vcombine.low %v1432_v9, %v1439_v10  ;;  %v3312_v14 = vcombine.high %v1432_v9, %v1439_v10 }
 0x5af   : > { %v1451_v15 = vrot.slane %v1444_v11, %v5583_v16  ;;  %v1459_v17 = vrot.slane %v3311_v12, %v5583_v16  ;;  %v1467_v18 = vrot.slane %v1460_v13, %v5583_v16  ;;  %v1475_v19 = vrot.slane %v3312_v14, %v5583_v16 }
 0x5b1   : > { %v1476_v20 = vcombine.low %v1451_v15, %v1459_v17  ;;  %v1477_v21 = vcombine.high %v1451_v15, %v1459_v17  ;;  %v1492_v23 = vcombine.low %v1467_v18, %v1475_v19  ;;  %v1493_v24 = vcombine.high %v1467_v18, %v1475_v19 }
 0x5b3   : > { %v1484_v25 = vrot.slane %v1476_v20, %v5586_v22  ;;  %v1500_v26 = vrot.slane %v1492_v23, %v5586_v22  ;;  %v1491_v27 = vrot.slane %v1477_v21, %v5586_v22  ;;  %v1507_v28 = vrot.slane %v1493_v24, %v5586_v22 }
 0x5b5   : > { %v1508_v29 = vcombine.low %v1484_v25, %v1500_v26  ;;  %v1510_v30 = vcombine.low %v1491_v27, %v1507_v28  ;;  %v1509_v32 = vcombine.high %v1484_v25, %v1500_v26  ;;  %v1511_v1 = vcombine.high %v1491_v27, %v1507_v28 }
 0x5b7   : > { %3432 = vmatmul.mubr.msk.f32.vlgmr.msra.gmra.mrb[4].mxu1 %vm1804_vm5, %v1508_v29  ;;  %3442 = vmatmul.mubr.msk.f32.vlgmr.msra.gmra.mrb[2].mxu0 %vm1804_vm5, %v1510_v30 }
 0x5b8   : > { %3435 = vmatpush3.xpose.msk.msra.mxu1 %vm1804_vm5, %v1655_v31  ;;  %3436 = vmatprep.mubr.msk.f32.mxu1 %vm4709_vm4, %v4710_v39 }
 0x5b9   : > { %3444 = vmatprep.subr.mxu1 %v4710_v39  ;;  %3451 = vmatprep.mubr.msk.f32.mxu0 %vm4709_vm4, %v4710_v39 }
 0x5bb   : > { %3437 = vmatmul.mubr.msk.f32.vlgmr.msra.gmra.mrb[6].mxu1 %vm1804_vm5, %v1509_v32 }
 0x5bc   : > { %3445 = vmatpush3.xpose.msk.msra.mxu1 %vm1804_vm5, %v1657_v33  ;;  %3446 = vmatprep.mubr.msk.f32.mxu1 %vm4709_vm4, %v4710_v39 }
 0x5bd   : > { %3454 = vmatprep.subr.mxu1 %v4710_v39 }
 0x5bf   : > { %3447 = vmatmul.mubr.msk.f32.vlgmr.msra.gmra.mrb[8].mxu1 %vm1804_vm5, %v1511_v1 }
 0x5c0   : > { %3456 = vmatprep.mubr.msk.f32.mxu1 %vm4709_vm4, %v4710_v39 }
 0x68a   : > { %v1877_v37 = vpop.f32.mrb[4].mxu1  ;;  %v2029_v38 = vpop.f32.mrb[2].mxu0 }
 0x68b   : > { %v2109_v40 = vmul.f32 0.35355338, %v1877_v37  ;;  %v3433_v41 = vpop.f32.mrb[5].mxu1  ;;  %v3443_v42 = vpop.f32.mrb[3].mxu0  ;;  %v2111_v43 = vmul.f32 0.35355338, %v2029_v38 }
 0x68d   : > { %v2113_v44 = vsel %vm1804_vm5, %v2109_v40, -inf  ;;  %v2119_v48 = vsel %vm1804_vm5, %v2111_v43, -inf }
 0x68e   : > { %2114 = vmax.xlane.f32.xlu1 %v2113_v44  ;;  %v1953_v45 = vpop.f32.mrb[6].mxu1 }
 0x68f   : > { %v2110_v46 = vmul.f32 0.35355338, %v1953_v45  ;;  %v3438_v47 = vpop.f32.mrb[7].mxu1 }
 0x691   : > { %v2116_v49 = vsel %vm1804_vm5, %v2110_v46, -inf }
 0x692   : > { %2120 = vmax.xlane.f32.xlu1 %v2119_v48  ;;  %2117 = vmax.xlane.f32.xlu0 %v2116_v49  ;;  %v2105_v50 = vpop.f32.mrb[8].mxu1 }
 0x693   : > { %v2112_v51 = vmul.f32 0.35355338, %v2105_v50  ;;  %v3448_v53 = vpop.f32.mrb[9].mxu1 }
 0x695   : > { %v2122_v54 = vsel %vm1804_vm5, %v2112_v51, -inf }
 0x696   : > { %2123 = vmax.xlane.f32.xlu1 %v2122_v54 }
 0x6a7   : > { %1662 = vrot.lane.b32.xlu1 %v1363_v56, %s4713_s29 }
 0x71b   : > { %v2115_v57 = vpop.xlane.xlu1 %2114 }
 0x71c   : > { %v2125_v58 = vsub.f32 %v2109_v40, %v2115_v57 }
 0x71e   : > { %v2129_v59 = vmul.f32 1.442695, %v2125_v58 }
 0x71f   : > { %v2121_v60 = vpop.xlane.xlu1 %2120  ;;  %v2118_v61 = vpop.xlane.xlu0 %2117 }
 0x720   : > { %3870 = vpow2.f32 %v2129_v59  ;;  %v2127_v62 = vsub.f32 %v2111_v43, %v2121_v60  ;;  %v2126_v63 = vsub.f32 %v2110_v46, %v2118_v61 }
 0x722   : > { %v2133_v0 = vmul.f32 1.442695, %v2127_v62  ;;  %v2131_v2 = vmul.f32 1.442695, %v2126_v63 }
 0x723   : > { %v2124_v3 = vpop.xlane.xlu1 %2123 }
 0x724   : > { %3872 = vpow2.f32 %v2133_v0  ;;  %v2128_v4 = vsub.f32 %v2112_v51, %v2124_v3 }
 0x725   : > { %3874 = vpow2.f32 %v2131_v2 }
 0x726   : > { %v2135_v5 = vmul.f32 1.442695, %v2128_v4 }
 0x727   : > { %v1663_v14 = vpop.permute.xlu1 %1662 }
 0x728   : > { %3876 = vpow2.f32 %v2135_v5  ;;  %v1668_v20 = vcombine.low %v1363_v56, %v1663_v14  ;;  %v1669_v21 = vcombine.high %v1363_v56, %v1663_v14 }
 0x72a   : > { %v5645_v6 = vpop.eup %3870  ;;  %v1676_v27 = vrot.slane %v1668_v20, %v5583_v16  ;;  %v1683_v28 = vrot.slane %v1669_v21, %v5583_v16 }
 0x72b   : > { %v2137_v7 = vsel %vm1804_vm5, %v5645_v6, 0.0 }
 0x72c   : > { %2138 = vadd.xlane.f32.xlu0 %v2137_v7  ;;  %v2603_v7 = vld [vmem:[#allocation22 + $0x8] sm:$0xff] }
 0x72e   : > { %v5649_v8 = vpop.eup %3872 }
 0x72f   : > { %v3875_v9 = vpop.eup %3874  ;;  %v2143_v10 = vsel %vm1804_vm5, %v5649_v8, 0.0 }
 0x730   : > { %2144 = vadd.xlane.f32.xlu0 %v2143_v10  ;;  %v2140_v11 = vsel %vm1804_vm5, %v3875_v9, 0.0 }
 0x731   : > { %2141 = vadd.xlane.f32.xlu1 %v2140_v11 }
 0x732   : > { %v5654_v12 = vpop.eup %3876 }
 0x733   : > { %v2146_v13 = vsel %vm1804_vm5, %v5654_v12, 0.0 }
 0x735   : > { %2147 = vadd.xlane.f32.xlu1 %v2146_v13 }
 0x746   : > { %1665 = vrot.lane.b32.xlu1 %v1363_v56, %s4711_s25  ;;  %1659 = vrot.lane.b32.xlu0 %v1363_v56, %s4712_s20  ;;  %s4512_s25 = scalar_lea.vmem %s5736_s14, 128  ;;  %s4516_s20 = sshll.u32 %s4719_s18, 4  ;;  %s4517_s20 = int_to_ptr.vmem [resolvable:$false] %s4516_s20 }
 0x747   : > { %p4513_p8 = scmp.ne.s32.totalorder %s5736_s14, %s4512_s25  ;;  %s4518_s29 = scalar_lea.vmem %s4517_s20, 256 }
 0x748   : > { %p4519_p10 = scmp.lt.s32.totalorder %s5736_s14, %s4517_s20  ;;  %p4520_p4 = scmp.lt.s32.totalorder %s4518_s29, %s4512_s25 }
 0x749   : > { %p4514_p5 = pnand %p4513_p8, %p5978_p7 }
 0x74a   : > { %p4521_p3 = por %p4520_p4, %p4519_p10 }
 0x74b   : > { %p4515_p2 = pneg %p4514_p5 }
 0x74d   : > { %p4522_p9 = pnand %p4521_p3, %p4515_p2 }
 0x7b9   : > { %v2139_v15 = vpop.xlane.xlu0 %2138 }
 0x7ba   : > { %3878 = vrcp.f32 %v2139_v15 }
 0x7bd   : > { %v2145_v18 = vpop.xlane.xlu0 %2144 }
 0x7be   : > { %v2142_v17 = vpop.xlane.xlu1 %2141 }
 0x7bf   : > { %3880 = vrcp.f32 %v2142_v17 }
 0x7c0   : > { %3882 = vrcp.f32 %v2145_v18 }
 0x7c1   : > { %v1660_v23 = vpop.permute.xlu0 %1659 }
 0x7c2   : > { %v2148_v19 = vpop.xlane.xlu1 %2147 }
 0x7c3   : > { %3884 = vrcp.f32 %v2148_v19 }
 0x7c4   : > { %v3879_v48 = vpop.eup %3878 }
 0x7c5   : > { %v2153_v63 = vmul.f32 %v3879_v48, %v5645_v6  ;;  %v2602_v6 = vld [vmem:[#allocation22] sm:$0xff] }
 0x7c6   : > { %v1666_v24 = vpop.permute.xlu1 %1665 }
 0x7c7   : > { %v1684_v25 = vcombine.low %v1660_v23, %v1666_v24  ;;  %v1685_v26 = vcombine.high %v1660_v23, %v1666_v24 }
 0x7c9   : > { %v1692_v29 = vrot.slane %v1684_v25, %v5583_v16  ;;  %v1699_v30 = vrot.slane %v1685_v26, %v5583_v16  ;;  %v3881_v54 = vpop.eup %3880 }
 0x7ca   : > { %v3883_v57 = vpop.eup %3882  ;;  %v2154_v0 = vmul.f32 %v3881_v54, %v3875_v9 }
 0x7cb   : > { %v1700_v31 = vcombine.low %v1676_v27, %v1692_v29  ;;  %v1701_v32 = vcombine.high %v1676_v27, %v1692_v29  ;;  %v1716_v33 = vcombine.low %v1683_v28, %v1699_v30  ;;  %v1717_v1 = vcombine.high %v1683_v28, %v1699_v30 }
 0x7cc   : > { %v2155_v4 = vmul.f32 %v3883_v57, %v5649_v8  ;;  %v3529_v8 = vpack.c.bf16 %v2603_v7, %v2602_v6 }
 0x7cd   : > { %v1708_v34 = vrot.slane %v1700_v31, %v5586_v22  ;;  %v1715_v35 = vrot.slane %v1701_v32, %v5586_v22  ;;  %v1724_v37 = vrot.slane %v1716_v33, %v5586_v22  ;;  %v1731_v38 = vrot.slane %v1717_v1, %v5586_v22  ;;  %v3885_v62 = vpop.eup %3884  ;;  %v2604_v31 = vld [vmem:[#allocation22 + $0x10] sm:$0xff]  ;;  %v2605_v32 = vld [vmem:[#allocation22 + $0x18] sm:$0xff] }
 0x7ce   : > { %v2156_v5 = vmul.f32 %v3885_v62, %v5654_v12 }
 0x7cf   : > { %v1736_v40 = vcombine.low %v1708_v34, %v1715_v35  ;;  %v3315_v41 = vcombine.high %v1708_v34, %v1715_v35  ;;  %v1752_v42 = vcombine.low %v1724_v37, %v1731_v38  ;;  %v3316_v43 = vcombine.high %v1724_v37, %v1731_v38 }
 0x7d0   : > { %v3532_v37 = vpack.c.bf16 %v2605_v32, %v2604_v31  ;;  %v3333_v31 = vld [vmem:[#allocation25] ss:$0 sm:$0xff] }
 0x7d1   : > { %v1743_v44 = vrot.slane %v1736_v40, %v5583_v16  ;;  %v1751_v45 = vrot.slane %v3315_v41, %v5583_v16  ;;  %v1759_v46 = vrot.slane %v1752_v42, %v5583_v16  ;;  %v1767_v47 = vrot.slane %v3316_v43, %v5583_v16 }
 0x7d3   : > { %v1768_v49 = vcombine.low %v1743_v44, %v1751_v45  ;;  %v1784_v50 = vcombine.low %v1759_v46, %v1767_v47  ;;  %v1769_v51 = vcombine.high %v1743_v44, %v1751_v45  ;;  %v1785_v53 = vcombine.high %v1759_v46, %v1767_v47 }
 0x7d5   : > { %v1776_v55 = vrot.slane %v1768_v49, %v5586_v22  ;;  %v1792_v56 = vrot.slane %v1784_v50, %v5586_v22  ;;  %v1783_v58 = vrot.slane %v1769_v51, %v5586_v22  ;;  %v1799_v59 = vrot.slane %v1785_v53, %v5586_v22 }
 0x7d7   : > { %v1800_v60 = vcombine.low %v1776_v55, %v1792_v56  ;;  %v1801_v61 = vcombine.high %v1776_v55, %v1792_v56  ;;  %v1802_v2 = vcombine.low %v1783_v58, %v1799_v59  ;;  %v1803_v3 = vcombine.high %v1783_v58, %v1799_v59 }
 0x7d9   : > { %3450 = vmatpush3.msra.mxu0 %v1800_v60  ;;  %3455 = vmatpush3.msra.mxu1 %v1801_v61 }
 0x7da   : > { %3452 = vmatmul.mubr.msk.f32.vlgmr.msra.gmra.mrb[4].mxu0 %vm1804_vm5, %v2153_v63  ;;  %3457 = vmatmul.mubr.msk.f32.vlgmr.msra.gmra.mrb[10].mxu1 %vm1804_vm5, %v2154_v0 }
 0x7db   : > { %3459 = vmatprep.subr.mxu0 %v4710_v39  ;;  %3464 = vmatprep.subr.mxu1 %v4710_v39 }
 0x7dc   : > { %3460 = vmatpush3.msra.mxu0 %v1802_v2  ;;  %3465 = vmatpush3.msra.mxu1 %v1803_v3 }
 0x7dd   : > { %3461 = vmatprep.mubr.msk.f32.mxu0 %vm4709_vm4, %v4710_v39  ;;  %3466 = vmatprep.mubr.msk.f32.mxu1 %vm4709_vm4, %v4710_v39 }
 0x7de   : > { %3462 = vmatmul.mubr.msk.f32.vlgmr.msra.gmra.mrb[6].mxu0 %vm1804_vm5, %v2155_v4  ;;  %3467 = vmatmul.mubr.msk.f32.vlgmr.msra.gmra.mrb[12].mxu1 %vm1804_vm5, %v2156_v5 }
 0x7df   : > { %3528 = vmatprep.subr.bf16.mxu0 %v4708_v36  ;;  %3477 = vmatprep.mubr.msk.f32.mxu0 %vm4709_vm4, %v4710_v39 }
 0x7e0   : > { %3534 = vmatprep.subr.bf16.mxu1 %v4708_v36  ;;  %3488 = vmatprep.mubr.msk.f32.mxu1 %vm4709_vm4, %v4710_v39 }
 0x7e1   : > { %3530 = vmatpush3.bf16.msra.mxu0 %v3529_v8 }
 0x7e2   : > { %3531 = vmatprep.subr.bf16.mxu0 %v4708_v36 }
 0x7e5   : > { %3533 = vmatpush3.bf16.msra.mxu0 %v3532_v37  ;;  %v2808_v37 = vld [vmem:[#allocation31 + $0x38] sm:$0xff] }
 0x7e6   : > { %3540 = vmatprep.subr.bf16.mxu0 %v4708_v36 }
 0x8ad   : > { %v2226_v9 = vpop.f32.mrb[4].mxu0  ;;  %v2299_v10 = vpop.f32.mrb[10].mxu1 }
 0x8ae   : > { %v3453_v11 = vpop.f32.mrb[5].mxu0  ;;  %v3458_v12 = vpop.f32.mrb[11].mxu1 }
 0x8af   : > { %v2716_v12 = vld [vmem:[#allocation28] sm:$0xff] }
 0x8b1   : > { %v2372_v13 = vpop.f32.mrb[6].mxu0  ;;  %v2445_v14 = vpop.f32.mrb[12].mxu1 }
 0x8b2   : > { %v2449_v15 = vcombine.low %v2226_v9, %v2372_v13  ;;  %v2450_v17 = vcombine.high %v2226_v9, %v2372_v13  ;;  %v2465_v18 = vcombine.low %v2299_v10, %v2445_v14  ;;  %v2466_v19 = vcombine.high %v2299_v10, %v2445_v14  ;;  %v3463_v20 = vpop.f32.mrb[7].mxu0  ;;  %v3468_v21 = vpop.f32.mrb[13].mxu1  ;;  %v2717_v13 = vld [vmem:[#allocation28 + $0x8] sm:$0xff] }
 0x8b3   : > { %v3535_v14 = vpack.c.bf16 %v2717_v13, %v2716_v12  ;;  %v2804_v21 = vld [vmem:[#allocation31 + $0x18] sm:$0xff] }
 0x8b4   : > { %v2457_v23 = vrot.slane %v2449_v15, %v5583_v16  ;;  %v2464_v24 = vrot.slane %v2450_v17, %v5583_v16  ;;  %v2473_v25 = vrot.slane %v2465_v18, %v5583_v16  ;;  %v2480_v26 = vrot.slane %v2466_v19, %v5583_v16  ;;  %v2719_v15 = vld [vmem:[#allocation28 + $0x18] sm:$0xff]  ;;  %v2802_v18 = vld [vmem:[#allocation31 + $0x8] sm:$0xff] }
 0x8b5   : > { %3536 = vmatpush3.bf16.msra.mxu1 %v3535_v14  ;;  %v2803_v19 = vld [vmem:[#allocation31 + $0x10] sm:$0xff] }
 0x8b6   : > { %v2481_v27 = vcombine.low %v2457_v23, %v2473_v25  ;;  %v2482_v28 = vcombine.high %v2457_v23, %v2473_v25  ;;  %v2497_v29 = vcombine.low %v2464_v24, %v2480_v26  ;;  %v2498_v30 = vcombine.high %v2464_v24, %v2480_v26  ;;  %3537 = vmatprep.subr.bf16.mxu1 %v4708_v36  ;;  %v2805_v24 = vld [vmem:[#allocation31 + $0x20] sm:$0xff]  ;;  %v2806_v25 = vld [vmem:[#allocation31 + $0x28] sm:$0xff] }
 0x8b7   : > { %v3544_v23 = vpack.c.bf16 %v2804_v21, %v2803_v19  ;;  %v3547_v26 = vpack.c.bf16 %v2806_v25, %v2805_v24 }
 0x8b8   : > { %v2489_v33 = vrot.slane %v2481_v27, %v5586_v22  ;;  %v2496_v1 = vrot.slane %v2482_v28, %v5586_v22  ;;  %v2505_v34 = vrot.slane %v2497_v29, %v5586_v22  ;;  %v2512_v35 = vrot.slane %v2498_v30, %v5586_v22 }
 0x8ba   : > { %v2517_v38 = vcombine.low %v2489_v33, %v2496_v1  ;;  %v3329_v40 = vcombine.high %v2489_v33, %v2496_v1  ;;  %v2533_v41 = vcombine.low %v2505_v34, %v2512_v35  ;;  %v3330_v42 = vcombine.high %v2505_v34, %v2512_v35  ;;  %v3334_v33 = vld [vmem:[#allocation26] ss:$0 sm:$0xff]  ;;  %v2807_v35 = vld [vmem:[#allocation31 + $0x30] sm:$0xff] }
 0x8bc   : > { %v2524_v43 = vrot.slane %v2517_v38, %v5583_v16  ;;  %v2532_v44 = vrot.slane %v3329_v40, %v5583_v16  ;;  %v2540_v45 = vrot.slane %v2533_v41, %v5583_v16  ;;  %v2548_v46 = vrot.slane %v3330_v42, %v5583_v16  ;;  %v3335_v40 = vld [vmem:[#allocation29] ss:$0 sm:$0xff] }
 0x8bd   : > { %v3550_v38 = vpack.c.bf16 %v2808_v37, %v2807_v35 }
 0x8be   : > { %v2550_v47 = vcombine.high %v2524_v43, %v2532_v44  ;;  %v2566_v48 = vcombine.high %v2540_v45, %v2548_v46  ;;  %v2549_v49 = vcombine.low %v2524_v43, %v2532_v44  ;;  %v2565_v50 = vcombine.low %v2540_v45, %v2548_v46  ;;  %v3337_v44 = vld [vmem:[#allocation32] ss:$0 sm:$0xff] }
 0x8c0   : > { %v2564_v51 = vrot.slane %v2550_v47, %v5586_v22  ;;  %v2580_v53 = vrot.slane %v2566_v48, %v5586_v22  ;;  %v2557_v54 = vrot.slane %v2549_v49, %v5586_v22  ;;  %v2573_v55 = vrot.slane %v2565_v50, %v5586_v22  ;;  %v3331_v22 = vld [vmem:[#allocation23] ss:$0 sm:$0xff] }
 0x8c2   : > { %v2583_v56 = vcombine.low %v2564_v51, %v2580_v53  ;;  %v2582_v57 = vcombine.high %v2557_v54, %v2573_v55  ;;  %v2584_v58 = vcombine.high %v2564_v51, %v2580_v53  ;;  %v2581_v59 = vcombine.low %v2557_v54, %v2573_v55 }
 0x8c4   : > { %2590 = vrot.lane.b32.xlu1 %v2583_v56, %s4716_s1  ;;  %2586 = vrot.lane.b32.xlu0 %v2582_v57, %s4717_s9 }
 0x8c8   : > { %2594 = vrot.lane.b32.xlu0 %v2584_v58, %s4718_s7 }
 0x936   : > { %v2587_v16 = vpop.permute.xlu0 %2586  ;;  %v2591_v60 = vpop.permute.xlu1 %2590 }
 0x937   : > { %v2597_v61 = vsel %vm1804_vm5, %v2581_v59, %v2587_v16  ;;  %v3339_v16 = vld [vmem:[#allocation34] ss:$0 sm:$0xff] }
 0x938   : > { %v2599_v63 = vsel %vm2598_vm6, %v2597_v61, %v2591_v60  ;;  %v3340_v61 = vld [vmem:[#allocation35] ss:$0 sm:$0xff] }
 0x93a   : > { %v2595_v62 = vpop.permute.xlu0 %2594 }
 0x93b   : > { %v2601_v0 = vsel %vm2600_vm7, %v2599_v63, %v2595_v62 }
 0x93c   : > { %3478 = vmatmul.mubr.msk.f32.vlgmr.msra.gmra.mrb[8].mxu0 %vm1087_vm3, %v2601_v0 }
 0x93d   : > { %3507 = vmatprep.mubr.msk.f32.mxu0 %vm4709_vm4, %v4710_v39  ;;  %v2718_v39 = vld [vmem:[#allocation28 + $0x10] sm:$0xff] }
 0x93e   : > { %v3538_v17 = vpack.c.bf16 %v2719_v15, %v2718_v39 }
 0x940   : > { %3539 = vmatpush3.bf16.msra.mxu1 %v3538_v17 }
 0xa0f   : > { %v2682_v2 = vpop.f32.mrb[8].mxu0 }
 0xa10   : > { %v2683_v3 = vadd.f32 %v3331_v22, %v2682_v2  ;;  %v3479_v4 = vpop.f32.mrb[9].mxu0 }
 0xa12   : > { %v2686_v5 = vadd.f32 %v2683_v3, %v5558_v52  ;;  %v2801_v52 = vld [vmem:[#allocation31] sm:$0xff] }
 0xa13   : > { %v3541_v20 = vpack.c.bf16 %v2802_v18, %v2801_v52 }
 0xa14   : > { %v2689_v6 = vsel %vm1087_vm3, %v2686_v5, 0.0 }
 0xa15   : > { %2690 = vadd.xlane.f32.xlu1 %v2689_v6  ;;  %3542 = vmatpush3.bf16.msra.mxu0 %v3541_v20 }
 0xa16   : > { %3543 = vmatprep.subr.bf16.mxu0 %v4708_v36 }
 0xa19   : > { %3545 = vmatpush3.bf16.msra.mxu0 %v3544_v23 }
 0xa1a   : > { %3546 = vmatprep.subr.bf16.mxu0 %v4708_v36 }
 0xa1d   : > { %3548 = vmatpush3.bf16.msra.mxu0 %v3547_v26 }
 0xa1e   : > { %3549 = vmatprep.subr.bf16.mxu0 %v4708_v36 }
 0xa21   : > { %3551 = vmatpush3.bf16.msra.mxu0 %v3550_v38 }
 0xaa2   : > { %v2691_v7 = vpop.xlane.xlu1 %2690 }
 0xaa3   : > { %v2692_v8 = vmul.f32 0.03125, %v2691_v7 }
 0xaa5   : > { %v2693_v9 = vsub.f32 %v2686_v5, %v2692_v8 }
 0xaa7   : > { %v2694_v10 = vmul.f32 %v2693_v9, %v2693_v9 }
 0xaa9   : > { %v2695_v11 = vsel %vm1087_vm3, %v2694_v10, 0.0 }
 0xaaa   : > { %2696 = vadd.xlane.f32.xlu0 %v2695_v11 }
 0xb37   : > { %v2697_v27 = vpop.xlane.xlu0 %2696 }
 0xb38   : > { %v2698_v28 = vmul.f32 0.03125, %v2697_v27 }
 0xb3a   : > { %v2699_v29 = vadd.f32 1e-05, %v2698_v28 }
 0xb3c   : > { %3886 = vrsqrt.f32 %v2699_v29 }
 0xb46   : > { %v3887_v30 = vpop.eup %3886 }
 0xb47   : > { %v2701_v32 = vmul.f32 %v3887_v30, %v2693_v9 }
 0xb49   : > { %v2708_v1 = vmul.f32 %v3333_v31, %v2701_v32 }
 0xb4b   : > { %v2715_v34 = vadd.f32 %v3334_v33, %v2708_v1 }
 0xb4d   : > { %3489 = vmatmul.mubr.msk.f32.vlgmr.msra.gmra.mrb[14].mxu1 %vm1087_vm3, %v2715_v34 }
 0xc20   : > { %v2796_v41 = vpop.f32.mrb[14].mxu1 }
 0xc21   : > { %v2797_v42 = vadd.f32 %v3335_v40, %v2796_v41  ;;  %v3490_v36 = vpop.f32.mrb[15].mxu1 }
 0xc23   : > { %v2800_v43 = vmax.f32 %v2797_v42, 0.0 }
 0xc25   : > { %3508 = vmatmul.mubr.msk.f32.vlgmr.msra.gmra.mrb[10].mxu0 %vm2816_vm8, %v2800_v43 }
 0xcf8   : > { %v2886_v45 = vpop.f32.mrb[10].mxu0 }
 0xcf9   : > { %v2887_v46 = vadd.f32 %v3337_v44, %v2886_v45  ;;  %v3509_v47 = vpop.f32.mrb[11].mxu0 }
 0xcfb   : > { %v2890_v48 = vadd.f32 %v2887_v46, %v2715_v34 }
 0xcfd   : > { %v2893_v49 = vsel %vm1087_vm3, %v2890_v48, 0.0 }
 0xcfe   : > { %2894 = vadd.xlane.f32.xlu0 %v2893_v49 }
 0xd8b   : > { %v2895_v50 = vpop.xlane.xlu0 %2894 }
 0xd8c   : > { %v2896_v51 = vmul.f32 0.03125, %v2895_v50 }
 0xd8e   : > { %v2897_v53 = vsub.f32 %v2890_v48, %v2896_v51 }
 0xd90   : > { %v2898_v54 = vmul.f32 %v2897_v53, %v2897_v53 }
 0xd92   : > { %v2899_v55 = vsel %vm1087_vm3, %v2898_v54, 0.0 }
 0xd93   : > { %2900 = vadd.xlane.f32.xlu1 %v2899_v55 }
 0xe20   : > { %v2901_v56 = vpop.xlane.xlu1 %2900 }
 0xe21   : > { %v2902_v57 = vmul.f32 0.03125, %v2901_v56 }
 0xe23   : > { %v2903_v58 = vadd.f32 1e-05, %v2902_v57 }
 0xe25   : > { %3888 = vrsqrt.f32 %v2903_v58 }
 0xe2f   : > { %v3889_v59 = vpop.eup %3888 }
 0xe30   : > { %v2905_v60 = vmul.f32 %v3889_v59, %v2897_v53 }
 0xe32   : > { %v2912_v62 = vmul.f32 %v3339_v16, %v2905_v60 }
 0xe34   : > { %v2919_v63 = vadd.f32 %v3340_v61, %v2912_v62 }
 0xe36   : > { %2920 = vst.msk [vmem:[%s1041_s23] sm:$0xff] %vm1087_vm3, %v2919_v63 }
 0xe37   : > { %4525 = shalt.err (!%p4522_p9)
}
 0xe38   : > { %s4526_s0 = scalar_lea.hbm %s5734_s15, 128  ;;  %s4530_s7 = scalar_lea.hbm %s5977_s22, 512 }
 0xe39   : > { %p4527_p0 = scmp.ne.s32.totalorder %s5734_s15, %s4526_s0  ;;  %p4531_p1 = scmp.lt.u32.totalorder %s5734_s15, %s5977_s22 }
 0xe3a   : > { %p4532_p11 = scmp.lt.u32.totalorder %s4530_s7, %s4526_s0  ;;  %p4534_p8 = scmp.lt.u32.totalorder %s4526_s0, %s5734_s15 }
 0xe3b   : > { %p4528_p6 = pnand %p4527_p0, %p5978_p7 }
 0xe3c   : > { %p4533_p13 = por %p4532_p11, %p4531_p1 }
 0xe3d   : > { %p4529_p12 = pneg %p4528_p6 }
 0xe3e   : > { %p4535_p5 = por %p4534_p8, %p4533_p13 }
 0xe40   : > { %p4536_p2 = pnand %p4535_p5, %p4529_p12 }
 0xe42   : > { %4539 = shalt.err (!%p4536_p2)
}
 0xe43   : > { %3634 = dma.vmem_to_hbm [thread:$0]  (%p5978_p7), %s5736_s14, 128, %s5734_s15, %s2922_s12  }
 0xe44 PF: > { %s5979_s26 = sld [smem:[#allocation55_spill]]  ;;  %s5980_s5 = sld [smem:[#allocation63_spill]] }
 0xe45   : > { %p3747_p10 = scmp.ge.s32.totalorder %s4682_s6, 2 }
 0xe4a   : > { %s2949_s3 = sand.u32 1, %s5979_s26   ;;  %p5981_p4 = scmp.ne.s32.totalorder %s5980_s5, 0 }
 0xe4b   : > { %s2950_s23 = scalar_lea.sflag [#allocation4], %s2949_s3 }
 0xe4c   : > { %p3705_p3 = pnand %p3747_p10, %p5981_p4 }
 0xe4e   : > { %4637 = dma.done.wait (!%p3705_p3), %s2950_s23, 128  }
 0xe4f   : > { %4639 = vsyncadd (!%p3705_p3), %s2950_s23, 4294967168  ;;  %s51_s6 = sadd.s32 1, %s4682_s6   ;;  %s5982_s3 = sld [smem:[#allocation53_spill]] }
 0xe50   : > { %p48_p9 = scmp.ge.s32.totalorder %s51_s6, 6   ;;  %s5983_s28 = sld [smem:[#allocation54_spill]] }
 0xe51   : > { %s5984_s2 = sld [smem:[#allocation56_spill]]  ;;  %s5985_s0 = sld [smem:[#allocation64_spill]] }
 0xe52   : > { %s5986_s23 = sld [smem:[#allocation59_spill]]  ;;  %s5987_s5 = sld [smem:[#allocation61_spill]] }
 0xe53   : > { %s5988_s14 = sld [smem:[#allocation62_spill]]  ;;  %s5989_s29 = smov %s5423_s21 }
 0xe54   : > { %s5990_s30 = smov %s4658_s4  ;;  %s5992_s1 = smov %s4678_s24 }
 0xe55   :  { %50 = sbr.rel (!%p48_p9) target bundleno = 45 (0x2d), region = 253 }
 0xe57   : > { %s5991_s4 = smov %s5984_s2 }
 0xe59   : > { %s5993_s24 = smov %s5988_s14 }
 0xe5c   :  { %2955 = vsyncpa [#allocation3], 1 }
 0xe5d   :  { %2957 = vsyncpa [#allocation3 + $0x1], 1 }
 0xe5e   :  { %2958 = vsyncpa [#allocation6], 1 }
 0xe5f   :  { %2960 = vsyncpa [#allocation6 + $0x1], 1 }
 0xe60   :  { %2961 = vsyncpa [#allocation9], 1 }
 0xe61   :  { %2962 = vsyncpa [#allocation12], 1 }
 0xe62   :  { %2963 = vsyncpa [#allocation15], 1 }
 0xe63   :  { %2964 = vsyncpa [#allocation18], 1 }
 0xe64   :  { %2965 = vsyncpa [#allocation21], 1 }
 0xe65   :  { %2966 = vsyncpa [#allocation24], 1 }
 0xe66   :  { %2967 = vsyncpa [#allocation27], 1 }
 0xe67   :  { %2968 = vsyncpa [#allocation30], 1 }
 0xe68   :  { %2969 = vsyncpa [#allocation33], 1 }
 0xe69   :  { %2970 = vsyncpa [#allocation36], 1 }
 0xe6a   :  { %2971 = vsyncpa [#allocation4], 1 }
 0xe6b   :  { %2973 = vsyncpa [#allocation4 + $0x1], 1 }

</bundles_post_ra>
